<compile_context>
chip_gen: v7x
topology: tpu7x:2x2x1
jax: 0.10.0
libtpu: 0.0.40
codegen_flags: <defaults>
</compile_context>

<pallas_src>
import numpy as np
import jax
import jax.numpy as jnp
from jax import lax
from jax.experimental import pallas as pl
from jax.experimental.pallas import tpu as pltpu


def _roll(x, shift, axis):
    """Static roll. pltpu.roll (XLU vrot) when the axis is tile-aligned, else
    jnp.roll (slice+concat), which always lowers and is cheap at small S."""
    size = x.shape[axis]
    native = 128 if axis == x.ndim - 1 else 8
    if size % native == 0:
        return pltpu.roll(x, shift, axis)
    return jnp.roll(x, shift, axis)


def make_attention_rel_vec(emb_size, num_heads, seq_len, eps=1e-5,
                           compute_dtype=jnp.bfloat16, out_dtype=jnp.float32,
                           block_b=None, vmem_limit_bytes=None):
    E, H, S = emb_size, num_heads, seq_len
    Dh = E // H
    scale = float(emb_size) ** (-0.5)
    nbits = max(1, (S - 1).bit_length())   # bits to encode roll amounts in [0, S)
    approx_recip = np.dtype(compute_dtype) != np.dtype(jnp.float32)

    def _pick_block_b(B):
        if block_b is not None:
            if B % block_b != 0:
                raise ValueError("block_b must divide the batch size")
            return block_b
        best = 1
        for d in range(1, B + 1):
            if B % d:
                continue
            if d * S > 512:            # bound the fused-projection block (VMEM/vregs)
                continue
            if d * H > 64:             # bound the Python unroll of the (batch, head) loop
                continue
            if B >= 2 and (B // d) < 2:   # keep >= 2 parallel grid steps (v7x: 2 TCs)
                continue
            best = d
        return best

    def forward(x, Wq, Wk, Wv, Er, gamma, beta):
        B = x.shape[0]
        Bt = _pick_block_b(B)
        R = Bt * S                      # rows handled per grid step

        # Fuse all heads' QEr matmuls into one block-diagonal matmul when the
        # resulting (R, H*S) f32 temporary is small; otherwise per-head matmuls.
        fuse_er = (R * H * S * 4) <= (2 << 20)

        def kernel(x_ref, w_ref, er_ref, gamma_ref, beta_ref, o_ref):
            x2 = x_ref[...]                                   # (R, E)   compute dtype
            w = w_ref[...]                                    # (E, 3E)  compute dtype

            # Fused QKV projection for all Bt batches: one MXU matmul, f32 acc.
            qkv = jnp.dot(x2, w, preferred_element_type=jnp.float32)     # (R, 3E)

            # Fold the emb_size**-0.5 scale into q (scales q.k^T and Srel alike),
            # cast MXU operands once (hoisted out of the (batch, head) loop).
            q_c = (qkv[:, :E] * scale).astype(compute_dtype)
            k_c = qkv[:, E:2 * E].astype(compute_dtype)
            v_c = qkv[:, 2 * E:3 * E].astype(compute_dtype)

            if fuse_er:
                # er_ref = blockdiag(Er^T, ..., Er^T): (E, H*S). One matmul gives
                # the (already scaled) QEr for every (batch, head) in the block.
                qer_all = jnp.dot(q_c, er_ref[...],
                                  preferred_element_type=jnp.float32)    # (R, H*S)

            # ---- in-kernel index helpers (no captured constants) --------------
            row = lax.broadcasted_iota(jnp.int32, (S, 1), 0)
            amt = row + 1
            amt = jnp.where(amt >= S, amt - S, amt)          # (row + 1) mod S
            bit_masks = [((amt >> b) & 1) == 1 for b in range(nbits)]
            ii = lax.broadcasted_iota(jnp.int32, (S, S), 0)
            jj = lax.broadcasted_iota(jnp.int32, (S, S), 1)
            lower = jj <= ii             # j <= i
            diag1 = jj == ii + 1         # j == i + 1  -> 0 in the skewed matrix

            def skew(qer):
                # A[r, j] = QEr[r, (j - r - 1) mod S]: right-roll row r by (r+1) mod S,
                # realized as log2(S) conditional static rolls (no MXU work).
                a = qer
                for b in range(nbits):
                    a = jnp.where(bit_masks[b], _roll(a, 1 << b, axis=1), a)
                # B[i, :] = A[i+1, :] (roll by S-1 == -1; wrap row is masked below).
                b_up = _roll(a, S - 1, axis=0)
                return jnp.where(lower, a, jnp.where(diag1, jnp.float32(0.0), b_up))

            # ---- attention per (batch-in-block, head); Bt and H are small -----
            rows = []
            for b in range(Bt):
                r0 = b * S
                head_outs = []
                for h in range(H):
                    c0 = h * Dh
                    qh = q_c[r0:r0 + S, c0:c0 + Dh]           # (S, Dh)
                    kh = k_c[r0:r0 + S, c0:c0 + Dh]
                    vh = v_c[r0:r0 + S, c0:c0 + Dh]

                    if fuse_er:
                        qer = qer_all[r0:r0 + S, h * S:(h + 1) * S]      # (S, S) f32
                    else:
                        qer = lax.dot_general(qh, er_ref[...],
                                              (((1,), (1,)), ((), ())),
                                              preferred_element_type=jnp.float32)
                    srel = skew(qer)

                    logits = lax.dot_general(qh, kh, (((1,), (1,)), ((), ())),
                                             preferred_element_type=jnp.float32)
                    logits = logits + srel                    # scale already in q
                    logits = logits - jnp.max(logits, axis=-1, keepdims=True)
                    p = jnp.exp(logits)
                    denom = jnp.sum(p, axis=-1, keepdims=True)
                    # EUP reciprocal instead of VALU divide (approx only in bf16 path).
                    p = p * pl.reciprocal(denom, approx=approx_recip)

                    head_outs.append(jnp.dot(p.astype(compute_dtype), vh,
                                             preferred_element_type=jnp.float32))
                rows.append(jnp.concatenate(head_outs, axis=-1) if H > 1
                            else head_outs[0])
            o = jnp.concatenate(rows, axis=0) if Bt > 1 else rows[0]     # (R, E) f32

            # ---- LayerNorm (f32) + single lane-contiguous store ---------------
            mean = jnp.mean(o, axis=-1, keepdims=True)
            var = jnp.mean(jnp.square(o - mean), axis=-1, keepdims=True)
            y = (o - mean) * lax.rsqrt(var + eps)
            y = y * gamma_ref[...] + beta_ref[...]
            o_ref[...] = y.astype(o_ref.dtype)

        # ---- wrapper-side operand prep ----------------------------------------
        # nn.Linear computes y = x @ W^T; fuse the three projections into (E, 3E).
        w_fused = jnp.concatenate([Wq.T, Wk.T, Wv.T], axis=1).astype(compute_dtype)
        x2d = x.reshape(B * S, E).astype(compute_dtype)       # contiguous, free reshape
        if fuse_er:
            er_in = jnp.kron(jnp.eye(H, dtype=jnp.float32),
                             Er.T.astype(jnp.float32)).astype(compute_dtype)  # (E, H*S)
            er_spec = pl.BlockSpec((E, H * S), lambda b: (0, 0))
        else:
            er_in = Er.astype(compute_dtype)                  # (S, Dh)
            er_spec = pl.BlockSpec((S, Dh), lambda b: (0, 0))
        gamma2 = gamma.reshape(1, E).astype(jnp.float32)
        beta2 = beta.reshape(1, E).astype(jnp.float32)

        out2d = pl.pallas_call(
            kernel,
            out_shape=jax.ShapeDtypeStruct((B * S, E), out_dtype),
            grid=(B // Bt,),
            in_specs=[
                pl.BlockSpec((R, E), lambda b: (b, 0)),
                pl.BlockSpec((E, 3 * E), lambda b: (0, 0)),
                er_spec,
                pl.BlockSpec((1, E), lambda b: (0, 0)),
                pl.BlockSpec((1, E), lambda b: (0, 0)),
            ],
            out_specs=pl.BlockSpec((R, E), lambda b: (b, 0)),
            compiler_params=pltpu.CompilerParams(
                dimension_semantics=("parallel",),
                vmem_limit_bytes=vmem_limit_bytes,   # None -> default scoped limit
            ),
        )(x2d, w_fused, er_in, gamma2, beta2)
        return out2d.reshape(B, S, E)

    return forward


def ref_forward_np(x, Wq, Wk, Wv, Er, gamma, beta, H, eps=1e-5):
    # Straight numpy transcription of the PyTorch forward (float64).
    x, Wq, Wk, Wv, Er = (np.asarray(a, np.float64) for a in (x, Wq, Wk, Wv, Er))
    gamma, beta = np.asarray(gamma, np.float64), np.asarray(beta, np.float64)
    B, S, E = x.shape
    Dh = E // H
    scale = E ** (-0.5)
    k = (x @ Wk.T).reshape(B, S, H, Dh).transpose(0, 2, 3, 1)   # (B,H,Dh,S)
    v = (x @ Wv.T).reshape(B, S, H, Dh).transpose(0, 2, 1, 3)   # (B,H,S,Dh)
    q = (x @ Wq.T).reshape(B, S, H, Dh).transpose(0, 2, 1, 3)   # (B,H,S,Dh)
    QEr = q @ Er.T                                              # (B,H,S,S)
    padded = np.pad(QEr, ((0, 0), (0, 0), (0, 0), (1, 0)))
    srel = padded.reshape(B, H, S + 1, S)[:, :, 1:, :]
    attn = (q @ k + srel) * scale
    attn = attn - attn.max(-1, keepdims=True)
    attn = np.exp(attn)
    attn = attn / attn.sum(-1, keepdims=True)
    out = (attn @ v).transpose(0, 2, 1, 3).reshape(B, S, E)
    mean = out.mean(-1, keepdims=True)
    var = ((out - mean) ** 2).mean(-1, keepdims=True)
    return (out - mean) / np.sqrt(var + eps) * gamma + beta


if __name__ == "__main__":
    B, S, E, H = 4, 8, 32, 4       # B=4 so the default Bt=2 block path is exercised
    Dh = E // H

    key = jax.random.PRNGKey(0)
    kx, kq, kk, kv, ke = jax.random.split(key, 5)
    x = jax.random.normal(kx, (B, S, E), jnp.float32)
    Wq = jax.random.normal(kq, (E, E), jnp.float32) * (E ** -0.5)
    Wk = jax.random.normal(kk, (E, E), jnp.float32) * (E ** -0.5)
    Wv = jax.random.normal(kv, (E, E), jnp.float32) * (E ** -0.5)
    Er = jax.random.normal(ke, (S, Dh), jnp.float32)
    gamma = jnp.ones((E,), jnp.float32)   # nn.LayerNorm default init
    beta = jnp.zeros((E,), jnp.float32)

    ref = ref_forward_np(x, Wq, Wk, Wv, Er, gamma, beta, H)

    # Strict correctness gate: f32 compute path vs float64 reference.
    fwd_f32 = make_attention_rel_vec(E, H, S, compute_dtype=jnp.float32)
    out_f32 = jax.block_until_ready(fwd_f32(x, Wq, Wk, Wv, Er, gamma, beta))
    np.testing.assert_allclose(np.asarray(out_f32), ref, rtol=2e-3, atol=2e-3)

    # Default fast path: bf16 MXU operands, f32 accumulation/softmax/LayerNorm.
    # Looser tolerance only reflects bf16 operand rounding (f32 path above is the gate).
    fwd_bf16 = make_attention_rel_vec(E, H, S)
    out_bf16 = jax.block_until_ready(fwd_bf16(x, Wq, Wk, Wv, Er, gamma, beta))
    np.testing.assert_allclose(np.asarray(out_bf16), ref, rtol=1e-1, atol=1e-1)

    print("KERNEL_OK")
</pallas_src>

<mosaic_0001>
module attributes {stable_mosaic.version = 11 : i64} {
  func.func @kernel(%arg0: i32, %arg1: memref<16x32xf32, #tpu.memory_space<vmem>>, %arg2: memref<32x96xf32, #tpu.memory_space<vmem>>, %arg3: memref<32x32xf32, #tpu.memory_space<vmem>>, %arg4: memref<1x32xf32, #tpu.memory_space<vmem>>, %arg5: memref<1x32xf32, #tpu.memory_space<vmem>>, %arg6: memref<16x32xf32, #tpu.memory_space<vmem>>) attributes {dimension_semantics = [#tpu.dimension_semantics<parallel>], iteration_bounds = array<i64: 2>, scalar_prefetch = 0 : i64, scratch_operands = 0 : i64, tpu.core_type = #tpu.core_type<tc>, window_params = [{transform_indices = @transform_0, window_bounds = array<i64: 16, 32>}, {pipeline_mode = #tpu.pipeline_mode<synchronous>, transform_indices = @transform_1, window_bounds = array<i64: 32, 96>}, {pipeline_mode = #tpu.pipeline_mode<synchronous>, transform_indices = @transform_2, window_bounds = array<i64: 32, 32>}, {pipeline_mode = #tpu.pipeline_mode<synchronous>, transform_indices = @transform_3, window_bounds = array<i64: 1, 32>}, {pipeline_mode = #tpu.pipeline_mode<synchronous>, transform_indices = @transform_4, window_bounds = array<i64: 1, 32>}, {transform_indices = @transform_5, window_bounds = array<i64: 16, 32>}]} {
    %c0 = arith.constant 0 : index
    %c0_0 = arith.constant 0 : index
    %0 = vector.load %arg1[%c0, %c0_0] : memref<16x32xf32, #tpu.memory_space<vmem>>, vector<16x32xf32>
    %c0_1 = arith.constant 0 : index
    %c0_2 = arith.constant 0 : index
    %1 = vector.load %arg2[%c0_1, %c0_2] : memref<32x96xf32, #tpu.memory_space<vmem>>, vector<32x96xf32>
    %cst = arith.constant dense<0.000000e+00> : vector<16x96xf32>
    %2 = tpu.matmul %0, %1, %cst {dimension_numbers = #tpu.dot_dimension_numbers<[1], [0], [0], [1], [0, 0, 1, 1], [], []>} : vector<16x32xf32>, vector<32x96xf32>, vector<16x96xf32> -> vector<16x96xf32>
    %3 = vector.extract_strided_slice %2 {offsets = [0, 0], sizes = [16, 32], strides = [1, 1]} : vector<16x96xf32> to vector<16x32xf32>
    %cst_3 = arith.constant 0.176776692 : f32
    %4 = vector.broadcast %cst_3 : f32 to vector<16x32xf32>
    %5 = arith.mulf %3, %4 : vector<16x32xf32>
    %6 = vector.extract_strided_slice %2 {offsets = [0, 32], sizes = [16, 32], strides = [1, 1]} : vector<16x96xf32> to vector<16x32xf32>
    %7 = vector.extract_strided_slice %2 {offsets = [0, 64], sizes = [16, 32], strides = [1, 1]} : vector<16x96xf32> to vector<16x32xf32>
    %c0_4 = arith.constant 0 : index
    %c0_5 = arith.constant 0 : index
    %8 = vector.load %arg3[%c0_4, %c0_5] : memref<32x32xf32, #tpu.memory_space<vmem>>, vector<32x32xf32>
    %cst_6 = arith.constant dense<0.000000e+00> : vector<16x32xf32>
    %9 = tpu.matmul %5, %8, %cst_6 {dimension_numbers = #tpu.dot_dimension_numbers<[1], [0], [0], [1], [0, 0, 1, 1], [], []>} : vector<16x32xf32>, vector<32x32xf32>, vector<16x32xf32> -> vector<16x32xf32>
    %10 = tpu.iota {dimensions = array<i32: 0>} : vector<8x1xi32>
    %c1_i32 = arith.constant 1 : i32
    %11 = vector.broadcast %c1_i32 : i32 to vector<8x1xi32>
    %12 = arith.addi %10, %11 : vector<8x1xi32>
    %c8_i32 = arith.constant 8 : i32
    %13 = vector.broadcast %c8_i32 : i32 to vector<8x1xi32>
    %14 = arith.cmpi sge, %12, %13 : vector<8x1xi32>
    %c8_i32_7 = arith.constant 8 : i32
    %15 = vector.broadcast %c8_i32_7 : i32 to vector<8x1xi32>
    %16 = arith.subi %12, %15 : vector<8x1xi32>
    %17 = arith.select %14, %16, %12 : vector<8x1xi1>, vector<8x1xi32>
    %c0_i32 = arith.constant 0 : i32
    %18 = vector.broadcast %c0_i32 : i32 to vector<8x1xi32>
    %19 = arith.shrsi %17, %18 : vector<8x1xi32>
    %c1_i32_8 = arith.constant 1 : i32
    %20 = vector.broadcast %c1_i32_8 : i32 to vector<8x1xi32>
    %21 = arith.andi %19, %20 : vector<8x1xi32>
    %c1_i32_9 = arith.constant 1 : i32
    %22 = vector.broadcast %c1_i32_9 : i32 to vector<8x1xi32>
    %23 = arith.cmpi eq, %21, %22 : vector<8x1xi32>
    %c1_i32_10 = arith.constant 1 : i32
    %24 = vector.broadcast %c1_i32_10 : i32 to vector<8x1xi32>
    %25 = arith.shrsi %17, %24 : vector<8x1xi32>
    %c1_i32_11 = arith.constant 1 : i32
    %26 = vector.broadcast %c1_i32_11 : i32 to vector<8x1xi32>
    %27 = arith.andi %25, %26 : vector<8x1xi32>
    %c1_i32_12 = arith.constant 1 : i32
    %28 = vector.broadcast %c1_i32_12 : i32 to vector<8x1xi32>
    %29 = arith.cmpi eq, %27, %28 : vector<8x1xi32>
    %c2_i32 = arith.constant 2 : i32
    %30 = vector.broadcast %c2_i32 : i32 to vector<8x1xi32>
    %31 = arith.shrsi %17, %30 : vector<8x1xi32>
    %c1_i32_13 = arith.constant 1 : i32
    %32 = vector.broadcast %c1_i32_13 : i32 to vector<8x1xi32>
    %33 = arith.andi %31, %32 : vector<8x1xi32>
    %c1_i32_14 = arith.constant 1 : i32
    %34 = vector.broadcast %c1_i32_14 : i32 to vector<8x1xi32>
    %35 = arith.cmpi eq, %33, %34 : vector<8x1xi32>
    %36 = tpu.iota {dimensions = array<i32: 0>} : vector<8x8xi32>
    %37 = tpu.iota {dimensions = array<i32: 1>} : vector<8x8xi32>
    %38 = arith.cmpi sle, %37, %36 : vector<8x8xi32>
    %c1_i32_15 = arith.constant 1 : i32
    %39 = vector.broadcast %c1_i32_15 : i32 to vector<8x8xi32>
    %40 = arith.addi %36, %39 : vector<8x8xi32>
    %41 = arith.cmpi eq, %37, %40 : vector<8x8xi32>
    %42 = vector.extract_strided_slice %5 {offsets = [0, 0], sizes = [8, 8], strides = [1, 1]} : vector<16x32xf32> to vector<8x8xf32>
    %43 = vector.extract_strided_slice %6 {offsets = [0, 0], sizes = [8, 8], strides = [1, 1]} : vector<16x32xf32> to vector<8x8xf32>
    %44 = vector.extract_strided_slice %7 {offsets = [0, 0], sizes = [8, 8], strides = [1, 1]} : vector<16x32xf32> to vector<8x8xf32>
    %45 = vector.extract_strided_slice %9 {offsets = [0, 0], sizes = [8, 8], strides = [1, 1]} : vector<16x32xf32> to vector<8x8xf32>
    %46 = vector.extract_strided_slice %45 {offsets = [0, 7], sizes = [8, 1], strides = [1, 1]} : vector<8x8xf32> to vector<8x1xf32>
    %47 = vector.extract_strided_slice %45 {offsets = [0, 0], sizes = [8, 7], strides = [1, 1]} : vector<8x8xf32> to vector<8x7xf32>
    %48 = tpu.concatenate %46, %47 in 1 : vector<8x1xf32>, vector<8x7xf32> -> vector<8x8xf32>
    %49 = vector.shape_cast %23 : vector<8x1xi1> to vector<8x1xi1>
    %50 = vector.broadcast %49 : vector<8x1xi1> to vector<8x8xi1>
    %51 = arith.select %50, %48, %45 : vector<8x8xi1>, vector<8x8xf32>
    %52 = vector.extract_strided_slice %51 {offsets = [0, 6], sizes = [8, 2], strides = [1, 1]} : vector<8x8xf32> to vector<8x2xf32>
    %53 = vector.extract_strided_slice %51 {offsets = [0, 0], sizes = [8, 6], strides = [1, 1]} : vector<8x8xf32> to vector<8x6xf32>
    %54 = tpu.concatenate %52, %53 in 1 : vector<8x2xf32>, vector<8x6xf32> -> vector<8x8xf32>
    %55 = vector.shape_cast %29 : vector<8x1xi1> to vector<8x1xi1>
    %56 = vector.broadcast %55 : vector<8x1xi1> to vector<8x8xi1>
    %57 = arith.select %56, %54, %51 : vector<8x8xi1>, vector<8x8xf32>
    %58 = vector.extract_strided_slice %57 {offsets = [0, 4], sizes = [8, 4], strides = [1, 1]} : vector<8x8xf32> to vector<8x4xf32>
    %59 = vector.extract_strided_slice %57 {offsets = [0, 0], sizes = [8, 4], strides = [1, 1]} : vector<8x8xf32> to vector<8x4xf32>
    %60 = tpu.concatenate %58, %59 in 1 : vector<8x4xf32>, vector<8x4xf32> -> vector<8x8xf32>
    %61 = vector.shape_cast %35 : vector<8x1xi1> to vector<8x1xi1>
    %62 = vector.broadcast %61 : vector<8x1xi1> to vector<8x8xi1>
    %63 = arith.select %62, %60, %57 : vector<8x8xi1>, vector<8x8xf32>
    %c7_i32 = arith.constant 7 : i32
    %64 = tpu.dynamic_rotate %63 by %c7_i32 dim 0 : vector<8x8xf32>, i32 -> vector<8x8xf32>
    %cst_16 = arith.constant 0.000000e+00 : f32
    %65 = vector.broadcast %cst_16 : f32 to vector<8x8xf32>
    %66 = arith.select %41, %65, %64 : vector<8x8xi1>, vector<8x8xf32>
    %67 = arith.select %38, %63, %66 : vector<8x8xi1>, vector<8x8xf32>
    %cst_17 = arith.constant dense<0.000000e+00> : vector<8x8xf32>
    %68 = tpu.matmul %42, %43, %cst_17 {dimension_numbers = #tpu.dot_dimension_numbers<[1], [1], [0], [0], [0, 0, 1, 0], [], []>} : vector<8x8xf32>, vector<8x8xf32>, vector<8x8xf32> -> vector<8x8xf32>
    %69 = arith.addf %68, %67 : vector<8x8xf32>
    %cst_18 = arith.constant dense<0xFF800000> : vector<8xf32>
    %70 = vector.multi_reduction <maximumf>, %69, %cst_18 [1] : vector<8x8xf32> to vector<8xf32>
    %71 = vector.shape_cast %70 : vector<8xf32> to vector<8x1xf32>
    %72 = vector.broadcast %71 : vector<8x1xf32> to vector<8x8xf32>
    %73 = arith.subf %69, %72 : vector<8x8xf32>
    %74 = math.exp %73 : vector<8x8xf32>
    %cst_19 = arith.constant dense<0.000000e+00> : vector<8xf32>
    %75 = vector.multi_reduction <add>, %74, %cst_19 [1] : vector<8x8xf32> to vector<8xf32>
    %76 = vector.shape_cast %75 : vector<8xf32> to vector<8x1xf32>
    %77 = tpu.reciprocal %76 : vector<8x1xf32> -> vector<8x1xf32>
    %78 = vector.broadcast %77 : vector<8x1xf32> to vector<8x8xf32>
    %79 = arith.mulf %74, %78 : vector<8x8xf32>
    %cst_20 = arith.constant dense<0.000000e+00> : vector<8x8xf32>
    %80 = tpu.matmul %79, %44, %cst_20 {dimension_numbers = #tpu.dot_dimension_numbers<[1], [0], [0], [1], [0, 0, 1, 1], [], []>} : vector<8x8xf32>, vector<8x8xf32>, vector<8x8xf32> -> vector<8x8xf32>
    %81 = vector.extract_strided_slice %5 {offsets = [0, 8], sizes = [8, 8], strides = [1, 1]} : vector<16x32xf32> to vector<8x8xf32>
    %82 = vector.extract_strided_slice %6 {offsets = [0, 8], sizes = [8, 8], strides = [1, 1]} : vector<16x32xf32> to vector<8x8xf32>
    %83 = vector.extract_strided_slice %7 {offsets = [0, 8], sizes = [8, 8], strides = [1, 1]} : vector<16x32xf32> to vector<8x8xf32>
    %84 = vector.extract_strided_slice %9 {offsets = [0, 8], sizes = [8, 8], strides = [1, 1]} : vector<16x32xf32> to vector<8x8xf32>
    %85 = vector.extract_strided_slice %84 {offsets = [0, 7], sizes = [8, 1], strides = [1, 1]} : vector<8x8xf32> to vector<8x1xf32>
    %86 = vector.extract_strided_slice %84 {offsets = [0, 0], sizes = [8, 7], strides = [1, 1]} : vector<8x8xf32> to vector<8x7xf32>
    %87 = tpu.concatenate %85, %86 in 1 : vector<8x1xf32>, vector<8x7xf32> -> vector<8x8xf32>
    %88 = vector.shape_cast %23 : vector<8x1xi1> to vector<8x1xi1>
    %89 = vector.broadcast %88 : vector<8x1xi1> to vector<8x8xi1>
    %90 = arith.select %89, %87, %84 : vector<8x8xi1>, vector<8x8xf32>
    %91 = vector.extract_strided_slice %90 {offsets = [0, 6], sizes = [8, 2], strides = [1, 1]} : vector<8x8xf32> to vector<8x2xf32>
    %92 = vector.extract_strided_slice %90 {offsets = [0, 0], sizes = [8, 6], strides = [1, 1]} : vector<8x8xf32> to vector<8x6xf32>
    %93 = tpu.concatenate %91, %92 in 1 : vector<8x2xf32>, vector<8x6xf32> -> vector<8x8xf32>
    %94 = vector.shape_cast %29 : vector<8x1xi1> to vector<8x1xi1>
    %95 = vector.broadcast %94 : vector<8x1xi1> to vector<8x8xi1>
    %96 = arith.select %95, %93, %90 : vector<8x8xi1>, vector<8x8xf32>
    %97 = vector.extract_strided_slice %96 {offsets = [0, 4], sizes = [8, 4], strides = [1, 1]} : vector<8x8xf32> to vector<8x4xf32>
    %98 = vector.extract_strided_slice %96 {offsets = [0, 0], sizes = [8, 4], strides = [1, 1]} : vector<8x8xf32> to vector<8x4xf32>
    %99 = tpu.concatenate %97, %98 in 1 : vector<8x4xf32>, vector<8x4xf32> -> vector<8x8xf32>
    %100 = vector.shape_cast %35 : vector<8x1xi1> to vector<8x1xi1>
    %101 = vector.broadcast %100 : vector<8x1xi1> to vector<8x8xi1>
    %102 = arith.select %101, %99, %96 : vector<8x8xi1>, vector<8x8xf32>
    %c7_i32_21 = arith.constant 7 : i32
    %103 = tpu.dynamic_rotate %102 by %c7_i32_21 dim 0 : vector<8x8xf32>, i32 -> vector<8x8xf32>
    %cst_22 = arith.constant 0.000000e+00 : f32
    %104 = vector.broadcast %cst_22 : f32 to vector<8x8xf32>
    %105 = arith.select %41, %104, %103 : vector<8x8xi1>, vector<8x8xf32>
    %106 = arith.select %38, %102, %105 : vector<8x8xi1>, vector<8x8xf32>
    %cst_23 = arith.constant dense<0.000000e+00> : vector<8x8xf32>
    %107 = tpu.matmul %81, %82, %cst_23 {dimension_numbers = #tpu.dot_dimension_numbers<[1], [1], [0], [0], [0, 0, 1, 0], [], []>} : vector<8x8xf32>, vector<8x8xf32>, vector<8x8xf32> -> vector<8x8xf32>
    %108 = arith.addf %107, %106 : vector<8x8xf32>
    %cst_24 = arith.constant dense<0xFF800000> : vector<8xf32>
    %109 = vector.multi_reduction <maximumf>, %108, %cst_24 [1] : vector<8x8xf32> to vector<8xf32>
    %110 = vector.shape_cast %109 : vector<8xf32> to vector<8x1xf32>
    %111 = vector.broadcast %110 : vector<8x1xf32> to vector<8x8xf32>
    %112 = arith.subf %108, %111 : vector<8x8xf32>
    %113 = math.exp %112 : vector<8x8xf32>
    %cst_25 = arith.constant dense<0.000000e+00> : vector<8xf32>
    %114 = vector.multi_reduction <add>, %113, %cst_25 [1] : vector<8x8xf32> to vector<8xf32>
    %115 = vector.shape_cast %114 : vector<8xf32> to vector<8x1xf32>
    %116 = tpu.reciprocal %115 : vector<8x1xf32> -> vector<8x1xf32>
    %117 = vector.broadcast %116 : vector<8x1xf32> to vector<8x8xf32>
    %118 = arith.mulf %113, %117 : vector<8x8xf32>
    %cst_26 = arith.constant dense<0.000000e+00> : vector<8x8xf32>
    %119 = tpu.matmul %118, %83, %cst_26 {dimension_numbers = #tpu.dot_dimension_numbers<[1], [0], [0], [1], [0, 0, 1, 1], [], []>} : vector<8x8xf32>, vector<8x8xf32>, vector<8x8xf32> -> vector<8x8xf32>
    %120 = vector.extract_strided_slice %5 {offsets = [0, 16], sizes = [8, 8], strides = [1, 1]} : vector<16x32xf32> to vector<8x8xf32>
    %121 = vector.extract_strided_slice %6 {offsets = [0, 16], sizes = [8, 8], strides = [1, 1]} : vector<16x32xf32> to vector<8x8xf32>
    %122 = vector.extract_strided_slice %7 {offsets = [0, 16], sizes = [8, 8], strides = [1, 1]} : vector<16x32xf32> to vector<8x8xf32>
    %123 = vector.extract_strided_slice %9 {offsets = [0, 16], sizes = [8, 8], strides = [1, 1]} : vector<16x32xf32> to vector<8x8xf32>
    %124 = vector.extract_strided_slice %123 {offsets = [0, 7], sizes = [8, 1], strides = [1, 1]} : vector<8x8xf32> to vector<8x1xf32>
    %125 = vector.extract_strided_slice %123 {offsets = [0, 0], sizes = [8, 7], strides = [1, 1]} : vector<8x8xf32> to vector<8x7xf32>
    %126 = tpu.concatenate %124, %125 in 1 : vector<8x1xf32>, vector<8x7xf32> -> vector<8x8xf32>
    %127 = vector.shape_cast %23 : vector<8x1xi1> to vector<8x1xi1>
    %128 = vector.broadcast %127 : vector<8x1xi1> to vector<8x8xi1>
    %129 = arith.select %128, %126, %123 : vector<8x8xi1>, vector<8x8xf32>
    %130 = vector.extract_strided_slice %129 {offsets = [0, 6], sizes = [8, 2], strides = [1, 1]} : vector<8x8xf32> to vector<8x2xf32>
    %131 = vector.extract_strided_slice %129 {offsets = [0, 0], sizes = [8, 6], strides = [1, 1]} : vector<8x8xf32> to vector<8x6xf32>
    %132 = tpu.concatenate %130, %131 in 1 : vector<8x2xf32>, vector<8x6xf32> -> vector<8x8xf32>
    %133 = vector.shape_cast %29 : vector<8x1xi1> to vector<8x1xi1>
    %134 = vector.broadcast %133 : vector<8x1xi1> to vector<8x8xi1>
    %135 = arith.select %134, %132, %129 : vector<8x8xi1>, vector<8x8xf32>
    %136 = vector.extract_strided_slice %135 {offsets = [0, 4], sizes = [8, 4], strides = [1, 1]} : vector<8x8xf32> to vector<8x4xf32>
    %137 = vector.extract_strided_slice %135 {offsets = [0, 0], sizes = [8, 4], strides = [1, 1]} : vector<8x8xf32> to vector<8x4xf32>
    %138 = tpu.concatenate %136, %137 in 1 : vector<8x4xf32>, vector<8x4xf32> -> vector<8x8xf32>
    %139 = vector.shape_cast %35 : vector<8x1xi1> to vector<8x1xi1>
    %140 = vector.broadcast %139 : vector<8x1xi1> to vector<8x8xi1>
    %141 = arith.select %140, %138, %135 : vector<8x8xi1>, vector<8x8xf32>
    %c7_i32_27 = arith.constant 7 : i32
    %142 = tpu.dynamic_rotate %141 by %c7_i32_27 dim 0 : vector<8x8xf32>, i32 -> vector<8x8xf32>
    %cst_28 = arith.constant 0.000000e+00 : f32
    %143 = vector.broadcast %cst_28 : f32 to vector<8x8xf32>
    %144 = arith.select %41, %143, %142 : vector<8x8xi1>, vector<8x8xf32>
    %145 = arith.select %38, %141, %144 : vector<8x8xi1>, vector<8x8xf32>
    %cst_29 = arith.constant dense<0.000000e+00> : vector<8x8xf32>
    %146 = tpu.matmul %120, %121, %cst_29 {dimension_numbers = #tpu.dot_dimension_numbers<[1], [1], [0], [0], [0, 0, 1, 0], [], []>} : vector<8x8xf32>, vector<8x8xf32>, vector<8x8xf32> -> vector<8x8xf32>
    %147 = arith.addf %146, %145 : vector<8x8xf32>
    %cst_30 = arith.constant dense<0xFF800000> : vector<8xf32>
    %148 = vector.multi_reduction <maximumf>, %147, %cst_30 [1] : vector<8x8xf32> to vector<8xf32>
    %149 = vector.shape_cast %148 : vector<8xf32> to vector<8x1xf32>
    %150 = vector.broadcast %149 : vector<8x1xf32> to vector<8x8xf32>
    %151 = arith.subf %147, %150 : vector<8x8xf32>
    %152 = math.exp %151 : vector<8x8xf32>
    %cst_31 = arith.constant dense<0.000000e+00> : vector<8xf32>
    %153 = vector.multi_reduction <add>, %152, %cst_31 [1] : vector<8x8xf32> to vector<8xf32>
    %154 = vector.shape_cast %153 : vector<8xf32> to vector<8x1xf32>
    %155 = tpu.reciprocal %154 : vector<8x1xf32> -> vector<8x1xf32>
    %156 = vector.broadcast %155 : vector<8x1xf32> to vector<8x8xf32>
    %157 = arith.mulf %152, %156 : vector<8x8xf32>
    %cst_32 = arith.constant dense<0.000000e+00> : vector<8x8xf32>
    %158 = tpu.matmul %157, %122, %cst_32 {dimension_numbers = #tpu.dot_dimension_numbers<[1], [0], [0], [1], [0, 0, 1, 1], [], []>} : vector<8x8xf32>, vector<8x8xf32>, vector<8x8xf32> -> vector<8x8xf32>
    %159 = vector.extract_strided_slice %5 {offsets = [0, 24], sizes = [8, 8], strides = [1, 1]} : vector<16x32xf32> to vector<8x8xf32>
    %160 = vector.extract_strided_slice %6 {offsets = [0, 24], sizes = [8, 8], strides = [1, 1]} : vector<16x32xf32> to vector<8x8xf32>
    %161 = vector.extract_strided_slice %7 {offsets = [0, 24], sizes = [8, 8], strides = [1, 1]} : vector<16x32xf32> to vector<8x8xf32>
    %162 = vector.extract_strided_slice %9 {offsets = [0, 24], sizes = [8, 8], strides = [1, 1]} : vector<16x32xf32> to vector<8x8xf32>
    %163 = vector.extract_strided_slice %162 {offsets = [0, 7], sizes = [8, 1], strides = [1, 1]} : vector<8x8xf32> to vector<8x1xf32>
    %164 = vector.extract_strided_slice %162 {offsets = [0, 0], sizes = [8, 7], strides = [1, 1]} : vector<8x8xf32> to vector<8x7xf32>
    %165 = tpu.concatenate %163, %164 in 1 : vector<8x1xf32>, vector<8x7xf32> -> vector<8x8xf32>
    %166 = vector.shape_cast %23 : vector<8x1xi1> to vector<8x1xi1>
    %167 = vector.broadcast %166 : vector<8x1xi1> to vector<8x8xi1>
    %168 = arith.select %167, %165, %162 : vector<8x8xi1>, vector<8x8xf32>
    %169 = vector.extract_strided_slice %168 {offsets = [0, 6], sizes = [8, 2], strides = [1, 1]} : vector<8x8xf32> to vector<8x2xf32>
    %170 = vector.extract_strided_slice %168 {offsets = [0, 0], sizes = [8, 6], strides = [1, 1]} : vector<8x8xf32> to vector<8x6xf32>
    %171 = tpu.concatenate %169, %170 in 1 : vector<8x2xf32>, vector<8x6xf32> -> vector<8x8xf32>
    %172 = vector.shape_cast %29 : vector<8x1xi1> to vector<8x1xi1>
    %173 = vector.broadcast %172 : vector<8x1xi1> to vector<8x8xi1>
    %174 = arith.select %173, %171, %168 : vector<8x8xi1>, vector<8x8xf32>
    %175 = vector.extract_strided_slice %174 {offsets = [0, 4], sizes = [8, 4], strides = [1, 1]} : vector<8x8xf32> to vector<8x4xf32>
    %176 = vector.extract_strided_slice %174 {offsets = [0, 0], sizes = [8, 4], strides = [1, 1]} : vector<8x8xf32> to vector<8x4xf32>
    %177 = tpu.concatenate %175, %176 in 1 : vector<8x4xf32>, vector<8x4xf32> -> vector<8x8xf32>
    %178 = vector.shape_cast %35 : vector<8x1xi1> to vector<8x1xi1>
    %179 = vector.broadcast %178 : vector<8x1xi1> to vector<8x8xi1>
    %180 = arith.select %179, %177, %174 : vector<8x8xi1>, vector<8x8xf32>
    %c7_i32_33 = arith.constant 7 : i32
    %181 = tpu.dynamic_rotate %180 by %c7_i32_33 dim 0 : vector<8x8xf32>, i32 -> vector<8x8xf32>
    %cst_34 = arith.constant 0.000000e+00 : f32
    %182 = vector.broadcast %cst_34 : f32 to vector<8x8xf32>
    %183 = arith.select %41, %182, %181 : vector<8x8xi1>, vector<8x8xf32>
    %184 = arith.select %38, %180, %183 : vector<8x8xi1>, vector<8x8xf32>
    %cst_35 = arith.constant dense<0.000000e+00> : vector<8x8xf32>
    %185 = tpu.matmul %159, %160, %cst_35 {dimension_numbers = #tpu.dot_dimension_numbers<[1], [1], [0], [0], [0, 0, 1, 0], [], []>} : vector<8x8xf32>, vector<8x8xf32>, vector<8x8xf32> -> vector<8x8xf32>
    %186 = arith.addf %185, %184 : vector<8x8xf32>
    %cst_36 = arith.constant dense<0xFF800000> : vector<8xf32>
    %187 = vector.multi_reduction <maximumf>, %186, %cst_36 [1] : vector<8x8xf32> to vector<8xf32>
    %188 = vector.shape_cast %187 : vector<8xf32> to vector<8x1xf32>
    %189 = vector.broadcast %188 : vector<8x1xf32> to vector<8x8xf32>
    %190 = arith.subf %186, %189 : vector<8x8xf32>
    %191 = math.exp %190 : vector<8x8xf32>
    %cst_37 = arith.constant dense<0.000000e+00> : vector<8xf32>
    %192 = vector.multi_reduction <add>, %191, %cst_37 [1] : vector<8x8xf32> to vector<8xf32>
    %193 = vector.shape_cast %192 : vector<8xf32> to vector<8x1xf32>
    %194 = tpu.reciprocal %193 : vector<8x1xf32> -> vector<8x1xf32>
    %195 = vector.broadcast %194 : vector<8x1xf32> to vector<8x8xf32>
    %196 = arith.mulf %191, %195 : vector<8x8xf32>
    %cst_38 = arith.constant dense<0.000000e+00> : vector<8x8xf32>
    %197 = tpu.matmul %196, %161, %cst_38 {dimension_numbers = #tpu.dot_dimension_numbers<[1], [0], [0], [1], [0, 0, 1, 1], [], []>} : vector<8x8xf32>, vector<8x8xf32>, vector<8x8xf32> -> vector<8x8xf32>
    %198 = tpu.concatenate %80, %119, %158, %197 in 1 : vector<8x8xf32>, vector<8x8xf32>, vector<8x8xf32>, vector<8x8xf32> -> vector<8x32xf32>
    %199 = vector.extract_strided_slice %5 {offsets = [8, 0], sizes = [8, 8], strides = [1, 1]} : vector<16x32xf32> to vector<8x8xf32>
    %200 = vector.extract_strided_slice %6 {offsets = [8, 0], sizes = [8, 8], strides = [1, 1]} : vector<16x32xf32> to vector<8x8xf32>
    %201 = vector.extract_strided_slice %7 {offsets = [8, 0], sizes = [8, 8], strides = [1, 1]} : vector<16x32xf32> to vector<8x8xf32>
    %202 = vector.extract_strided_slice %9 {offsets = [8, 0], sizes = [8, 8], strides = [1, 1]} : vector<16x32xf32> to vector<8x8xf32>
    %203 = vector.extract_strided_slice %202 {offsets = [0, 7], sizes = [8, 1], strides = [1, 1]} : vector<8x8xf32> to vector<8x1xf32>
    %204 = vector.extract_strided_slice %202 {offsets = [0, 0], sizes = [8, 7], strides = [1, 1]} : vector<8x8xf32> to vector<8x7xf32>
    %205 = tpu.concatenate %203, %204 in 1 : vector<8x1xf32>, vector<8x7xf32> -> vector<8x8xf32>
    %206 = vector.shape_cast %23 : vector<8x1xi1> to vector<8x1xi1>
    %207 = vector.broadcast %206 : vector<8x1xi1> to vector<8x8xi1>
    %208 = arith.select %207, %205, %202 : vector<8x8xi1>, vector<8x8xf32>
    %209 = vector.extract_strided_slice %208 {offsets = [0, 6], sizes = [8, 2], strides = [1, 1]} : vector<8x8xf32> to vector<8x2xf32>
    %210 = vector.extract_strided_slice %208 {offsets = [0, 0], sizes = [8, 6], strides = [1, 1]} : vector<8x8xf32> to vector<8x6xf32>
    %211 = tpu.concatenate %209, %210 in 1 : vector<8x2xf32>, vector<8x6xf32> -> vector<8x8xf32>
    %212 = vector.shape_cast %29 : vector<8x1xi1> to vector<8x1xi1>
    %213 = vector.broadcast %212 : vector<8x1xi1> to vector<8x8xi1>
    %214 = arith.select %213, %211, %208 : vector<8x8xi1>, vector<8x8xf32>
    %215 = vector.extract_strided_slice %214 {offsets = [0, 4], sizes = [8, 4], strides = [1, 1]} : vector<8x8xf32> to vector<8x4xf32>
    %216 = vector.extract_strided_slice %214 {offsets = [0, 0], sizes = [8, 4], strides = [1, 1]} : vector<8x8xf32> to vector<8x4xf32>
    %217 = tpu.concatenate %215, %216 in 1 : vector<8x4xf32>, vector<8x4xf32> -> vector<8x8xf32>
    %218 = vector.shape_cast %35 : vector<8x1xi1> to vector<8x1xi1>
    %219 = vector.broadcast %218 : vector<8x1xi1> to vector<8x8xi1>
    %220 = arith.select %219, %217, %214 : vector<8x8xi1>, vector<8x8xf32>
    %c7_i32_39 = arith.constant 7 : i32
    %221 = tpu.dynamic_rotate %220 by %c7_i32_39 dim 0 : vector<8x8xf32>, i32 -> vector<8x8xf32>
    %cst_40 = arith.constant 0.000000e+00 : f32
    %222 = vector.broadcast %cst_40 : f32 to vector<8x8xf32>
    %223 = arith.select %41, %222, %221 : vector<8x8xi1>, vector<8x8xf32>
    %224 = arith.select %38, %220, %223 : vector<8x8xi1>, vector<8x8xf32>
    %cst_41 = arith.constant dense<0.000000e+00> : vector<8x8xf32>
    %225 = tpu.matmul %199, %200, %cst_41 {dimension_numbers = #tpu.dot_dimension_numbers<[1], [1], [0], [0], [0, 0, 1, 0], [], []>} : vector<8x8xf32>, vector<8x8xf32>, vector<8x8xf32> -> vector<8x8xf32>
    %226 = arith.addf %225, %224 : vector<8x8xf32>
    %cst_42 = arith.constant dense<0xFF800000> : vector<8xf32>
    %227 = vector.multi_reduction <maximumf>, %226, %cst_42 [1] : vector<8x8xf32> to vector<8xf32>
    %228 = vector.shape_cast %227 : vector<8xf32> to vector<8x1xf32>
    %229 = vector.broadcast %228 : vector<8x1xf32> to vector<8x8xf32>
    %230 = arith.subf %226, %229 : vector<8x8xf32>
    %231 = math.exp %230 : vector<8x8xf32>
    %cst_43 = arith.constant dense<0.000000e+00> : vector<8xf32>
    %232 = vector.multi_reduction <add>, %231, %cst_43 [1] : vector<8x8xf32> to vector<8xf32>
    %233 = vector.shape_cast %232 : vector<8xf32> to vector<8x1xf32>
    %234 = tpu.reciprocal %233 : vector<8x1xf32> -> vector<8x1xf32>
    %235 = vector.broadcast %234 : vector<8x1xf32> to vector<8x8xf32>
    %236 = arith.mulf %231, %235 : vector<8x8xf32>
    %cst_44 = arith.constant dense<0.000000e+00> : vector<8x8xf32>
    %237 = tpu.matmul %236, %201, %cst_44 {dimension_numbers = #tpu.dot_dimension_numbers<[1], [0], [0], [1], [0, 0, 1, 1], [], []>} : vector<8x8xf32>, vector<8x8xf32>, vector<8x8xf32> -> vector<8x8xf32>
    %238 = vector.extract_strided_slice %5 {offsets = [8, 8], sizes = [8, 8], strides = [1, 1]} : vector<16x32xf32> to vector<8x8xf32>
    %239 = vector.extract_strided_slice %6 {offsets = [8, 8], sizes = [8, 8], strides = [1, 1]} : vector<16x32xf32> to vector<8x8xf32>
    %240 = vector.extract_strided_slice %7 {offsets = [8, 8], sizes = [8, 8], strides = [1, 1]} : vector<16x32xf32> to vector<8x8xf32>
    %241 = vector.extract_strided_slice %9 {offsets = [8, 8], sizes = [8, 8], strides = [1, 1]} : vector<16x32xf32> to vector<8x8xf32>
    %242 = vector.extract_strided_slice %241 {offsets = [0, 7], sizes = [8, 1], strides = [1, 1]} : vector<8x8xf32> to vector<8x1xf32>
    %243 = vector.extract_strided_slice %241 {offsets = [0, 0], sizes = [8, 7], strides = [1, 1]} : vector<8x8xf32> to vector<8x7xf32>
    %244 = tpu.concatenate %242, %243 in 1 : vector<8x1xf32>, vector<8x7xf32> -> vector<8x8xf32>
    %245 = vector.shape_cast %23 : vector<8x1xi1> to vector<8x1xi1>
    %246 = vector.broadcast %245 : vector<8x1xi1> to vector<8x8xi1>
    %247 = arith.select %246, %244, %241 : vector<8x8xi1>, vector<8x8xf32>
    %248 = vector.extract_strided_slice %247 {offsets = [0, 6], sizes = [8, 2], strides = [1, 1]} : vector<8x8xf32> to vector<8x2xf32>
    %249 = vector.extract_strided_slice %247 {offsets = [0, 0], sizes = [8, 6], strides = [1, 1]} : vector<8x8xf32> to vector<8x6xf32>
    %250 = tpu.concatenate %248, %249 in 1 : vector<8x2xf32>, vector<8x6xf32> -> vector<8x8xf32>
    %251 = vector.shape_cast %29 : vector<8x1xi1> to vector<8x1xi1>
    %252 = vector.broadcast %251 : vector<8x1xi1> to vector<8x8xi1>
    %253 = arith.select %252, %250, %247 : vector<8x8xi1>, vector<8x8xf32>
    %254 = vector.extract_strided_slice %253 {offsets = [0, 4], sizes = [8, 4], strides = [1, 1]} : vector<8x8xf32> to vector<8x4xf32>
    %255 = vector.extract_strided_slice %253 {offsets = [0, 0], sizes = [8, 4], strides = [1, 1]} : vector<8x8xf32> to vector<8x4xf32>
    %256 = tpu.concatenate %254, %255 in 1 : vector<8x4xf32>, vector<8x4xf32> -> vector<8x8xf32>
    %257 = vector.shape_cast %35 : vector<8x1xi1> to vector<8x1xi1>
    %258 = vector.broadcast %257 : vector<8x1xi1> to vector<8x8xi1>
    %259 = arith.select %258, %256, %253 : vector<8x8xi1>, vector<8x8xf32>
    %c7_i32_45 = arith.constant 7 : i32
    %260 = tpu.dynamic_rotate %259 by %c7_i32_45 dim 0 : vector<8x8xf32>, i32 -> vector<8x8xf32>
    %cst_46 = arith.constant 0.000000e+00 : f32
    %261 = vector.broadcast %cst_46 : f32 to vector<8x8xf32>
    %262 = arith.select %41, %261, %260 : vector<8x8xi1>, vector<8x8xf32>
    %263 = arith.select %38, %259, %262 : vector<8x8xi1>, vector<8x8xf32>
    %cst_47 = arith.constant dense<0.000000e+00> : vector<8x8xf32>
    %264 = tpu.matmul %238, %239, %cst_47 {dimension_numbers = #tpu.dot_dimension_numbers<[1], [1], [0], [0], [0, 0, 1, 0], [], []>} : vector<8x8xf32>, vector<8x8xf32>, vector<8x8xf32> -> vector<8x8xf32>
    %265 = arith.addf %264, %263 : vector<8x8xf32>
    %cst_48 = arith.constant dense<0xFF800000> : vector<8xf32>
    %266 = vector.multi_reduction <maximumf>, %265, %cst_48 [1] : vector<8x8xf32> to vector<8xf32>
    %267 = vector.shape_cast %266 : vector<8xf32> to vector<8x1xf32>
    %268 = vector.broadcast %267 : vector<8x1xf32> to vector<8x8xf32>
    %269 = arith.subf %265, %268 : vector<8x8xf32>
    %270 = math.exp %269 : vector<8x8xf32>
    %cst_49 = arith.constant dense<0.000000e+00> : vector<8xf32>
    %271 = vector.multi_reduction <add>, %270, %cst_49 [1] : vector<8x8xf32> to vector<8xf32>
    %272 = vector.shape_cast %271 : vector<8xf32> to vector<8x1xf32>
    %273 = tpu.reciprocal %272 : vector<8x1xf32> -> vector<8x1xf32>
    %274 = vector.broadcast %273 : vector<8x1xf32> to vector<8x8xf32>
    %275 = arith.mulf %270, %274 : vector<8x8xf32>
    %cst_50 = arith.constant dense<0.000000e+00> : vector<8x8xf32>
    %276 = tpu.matmul %275, %240, %cst_50 {dimension_numbers = #tpu.dot_dimension_numbers<[1], [0], [0], [1], [0, 0, 1, 1], [], []>} : vector<8x8xf32>, vector<8x8xf32>, vector<8x8xf32> -> vector<8x8xf32>
    %277 = vector.extract_strided_slice %5 {offsets = [8, 16], sizes = [8, 8], strides = [1, 1]} : vector<16x32xf32> to vector<8x8xf32>
    %278 = vector.extract_strided_slice %6 {offsets = [8, 16], sizes = [8, 8], strides = [1, 1]} : vector<16x32xf32> to vector<8x8xf32>
    %279 = vector.extract_strided_slice %7 {offsets = [8, 16], sizes = [8, 8], strides = [1, 1]} : vector<16x32xf32> to vector<8x8xf32>
    %280 = vector.extract_strided_slice %9 {offsets = [8, 16], sizes = [8, 8], strides = [1, 1]} : vector<16x32xf32> to vector<8x8xf32>
    %281 = vector.extract_strided_slice %280 {offsets = [0, 7], sizes = [8, 1], strides = [1, 1]} : vector<8x8xf32> to vector<8x1xf32>
    %282 = vector.extract_strided_slice %280 {offsets = [0, 0], sizes = [8, 7], strides = [1, 1]} : vector<8x8xf32> to vector<8x7xf32>
    %283 = tpu.concatenate %281, %282 in 1 : vector<8x1xf32>, vector<8x7xf32> -> vector<8x8xf32>
    %284 = vector.shape_cast %23 : vector<8x1xi1> to vector<8x1xi1>
    %285 = vector.broadcast %284 : vector<8x1xi1> to vector<8x8xi1>
    %286 = arith.select %285, %283, %280 : vector<8x8xi1>, vector<8x8xf32>
    %287 = vector.extract_strided_slice %286 {offsets = [0, 6], sizes = [8, 2], strides = [1, 1]} : vector<8x8xf32> to vector<8x2xf32>
    %288 = vector.extract_strided_slice %286 {offsets = [0, 0], sizes = [8, 6], strides = [1, 1]} : vector<8x8xf32> to vector<8x6xf32>
    %289 = tpu.concatenate %287, %288 in 1 : vector<8x2xf32>, vector<8x6xf32> -> vector<8x8xf32>
    %290 = vector.shape_cast %29 : vector<8x1xi1> to vector<8x1xi1>
    %291 = vector.broadcast %290 : vector<8x1xi1> to vector<8x8xi1>
    %292 = arith.select %291, %289, %286 : vector<8x8xi1>, vector<8x8xf32>
    %293 = vector.extract_strided_slice %292 {offsets = [0, 4], sizes = [8, 4], strides = [1, 1]} : vector<8x8xf32> to vector<8x4xf32>
    %294 = vector.extract_strided_slice %292 {offsets = [0, 0], sizes = [8, 4], strides = [1, 1]} : vector<8x8xf32> to vector<8x4xf32>
    %295 = tpu.concatenate %293, %294 in 1 : vector<8x4xf32>, vector<8x4xf32> -> vector<8x8xf32>
    %296 = vector.shape_cast %35 : vector<8x1xi1> to vector<8x1xi1>
    %297 = vector.broadcast %296 : vector<8x1xi1> to vector<8x8xi1>
    %298 = arith.select %297, %295, %292 : vector<8x8xi1>, vector<8x8xf32>
    %c7_i32_51 = arith.constant 7 : i32
    %299 = tpu.dynamic_rotate %298 by %c7_i32_51 dim 0 : vector<8x8xf32>, i32 -> vector<8x8xf32>
    %cst_52 = arith.constant 0.000000e+00 : f32
    %300 = vector.broadcast %cst_52 : f32 to vector<8x8xf32>
    %301 = arith.select %41, %300, %299 : vector<8x8xi1>, vector<8x8xf32>
    %302 = arith.select %38, %298, %301 : vector<8x8xi1>, vector<8x8xf32>
    %cst_53 = arith.constant dense<0.000000e+00> : vector<8x8xf32>
    %303 = tpu.matmul %277, %278, %cst_53 {dimension_numbers = #tpu.dot_dimension_numbers<[1], [1], [0], [0], [0, 0, 1, 0], [], []>} : vector<8x8xf32>, vector<8x8xf32>, vector<8x8xf32> -> vector<8x8xf32>
    %304 = arith.addf %303, %302 : vector<8x8xf32>
    %cst_54 = arith.constant dense<0xFF800000> : vector<8xf32>
    %305 = vector.multi_reduction <maximumf>, %304, %cst_54 [1] : vector<8x8xf32> to vector<8xf32>
    %306 = vector.shape_cast %305 : vector<8xf32> to vector<8x1xf32>
    %307 = vector.broadcast %306 : vector<8x1xf32> to vector<8x8xf32>
    %308 = arith.subf %304, %307 : vector<8x8xf32>
    %309 = math.exp %308 : vector<8x8xf32>
    %cst_55 = arith.constant dense<0.000000e+00> : vector<8xf32>
    %310 = vector.multi_reduction <add>, %309, %cst_55 [1] : vector<8x8xf32> to vector<8xf32>
    %311 = vector.shape_cast %310 : vector<8xf32> to vector<8x1xf32>
    %312 = tpu.reciprocal %311 : vector<8x1xf32> -> vector<8x1xf32>
    %313 = vector.broadcast %312 : vector<8x1xf32> to vector<8x8xf32>
    %314 = arith.mulf %309, %313 : vector<8x8xf32>
    %cst_56 = arith.constant dense<0.000000e+00> : vector<8x8xf32>
    %315 = tpu.matmul %314, %279, %cst_56 {dimension_numbers = #tpu.dot_dimension_numbers<[1], [0], [0], [1], [0, 0, 1, 1], [], []>} : vector<8x8xf32>, vector<8x8xf32>, vector<8x8xf32> -> vector<8x8xf32>
    %316 = vector.extract_strided_slice %5 {offsets = [8, 24], sizes = [8, 8], strides = [1, 1]} : vector<16x32xf32> to vector<8x8xf32>
    %317 = vector.extract_strided_slice %6 {offsets = [8, 24], sizes = [8, 8], strides = [1, 1]} : vector<16x32xf32> to vector<8x8xf32>
    %318 = vector.extract_strided_slice %7 {offsets = [8, 24], sizes = [8, 8], strides = [1, 1]} : vector<16x32xf32> to vector<8x8xf32>
    %319 = vector.extract_strided_slice %9 {offsets = [8, 24], sizes = [8, 8], strides = [1, 1]} : vector<16x32xf32> to vector<8x8xf32>
    %320 = vector.extract_strided_slice %319 {offsets = [0, 7], sizes = [8, 1], strides = [1, 1]} : vector<8x8xf32> to vector<8x1xf32>
    %321 = vector.extract_strided_slice %319 {offsets = [0, 0], sizes = [8, 7], strides = [1, 1]} : vector<8x8xf32> to vector<8x7xf32>
    %322 = tpu.concatenate %320, %321 in 1 : vector<8x1xf32>, vector<8x7xf32> -> vector<8x8xf32>
    %323 = vector.shape_cast %23 : vector<8x1xi1> to vector<8x1xi1>
    %324 = vector.broadcast %323 : vector<8x1xi1> to vector<8x8xi1>
    %325 = arith.select %324, %322, %319 : vector<8x8xi1>, vector<8x8xf32>
    %326 = vector.extract_strided_slice %325 {offsets = [0, 6], sizes = [8, 2], strides = [1, 1]} : vector<8x8xf32> to vector<8x2xf32>
    %327 = vector.extract_strided_slice %325 {offsets = [0, 0], sizes = [8, 6], strides = [1, 1]} : vector<8x8xf32> to vector<8x6xf32>
    %328 = tpu.concatenate %326, %327 in 1 : vector<8x2xf32>, vector<8x6xf32> -> vector<8x8xf32>
    %329 = vector.shape_cast %29 : vector<8x1xi1> to vector<8x1xi1>
    %330 = vector.broadcast %329 : vector<8x1xi1> to vector<8x8xi1>
    %331 = arith.select %330, %328, %325 : vector<8x8xi1>, vector<8x8xf32>
    %332 = vector.extract_strided_slice %331 {offsets = [0, 4], sizes = [8, 4], strides = [1, 1]} : vector<8x8xf32> to vector<8x4xf32>
    %333 = vector.extract_strided_slice %331 {offsets = [0, 0], sizes = [8, 4], strides = [1, 1]} : vector<8x8xf32> to vector<8x4xf32>
    %334 = tpu.concatenate %332, %333 in 1 : vector<8x4xf32>, vector<8x4xf32> -> vector<8x8xf32>
    %335 = vector.shape_cast %35 : vector<8x1xi1> to vector<8x1xi1>
    %336 = vector.broadcast %335 : vector<8x1xi1> to vector<8x8xi1>
    %337 = arith.select %336, %334, %331 : vector<8x8xi1>, vector<8x8xf32>
    %c7_i32_57 = arith.constant 7 : i32
    %338 = tpu.dynamic_rotate %337 by %c7_i32_57 dim 0 : vector<8x8xf32>, i32 -> vector<8x8xf32>
    %cst_58 = arith.constant 0.000000e+00 : f32
    %339 = vector.broadcast %cst_58 : f32 to vector<8x8xf32>
    %340 = arith.select %41, %339, %338 : vector<8x8xi1>, vector<8x8xf32>
    %341 = arith.select %38, %337, %340 : vector<8x8xi1>, vector<8x8xf32>
    %cst_59 = arith.constant dense<0.000000e+00> : vector<8x8xf32>
    %342 = tpu.matmul %316, %317, %cst_59 {dimension_numbers = #tpu.dot_dimension_numbers<[1], [1], [0], [0], [0, 0, 1, 0], [], []>} : vector<8x8xf32>, vector<8x8xf32>, vector<8x8xf32> -> vector<8x8xf32>
    %343 = arith.addf %342, %341 : vector<8x8xf32>
    %cst_60 = arith.constant dense<0xFF800000> : vector<8xf32>
    %344 = vector.multi_reduction <maximumf>, %343, %cst_60 [1] : vector<8x8xf32> to vector<8xf32>
    %345 = vector.shape_cast %344 : vector<8xf32> to vector<8x1xf32>
    %346 = vector.broadcast %345 : vector<8x1xf32> to vector<8x8xf32>
    %347 = arith.subf %343, %346 : vector<8x8xf32>
    %348 = math.exp %347 : vector<8x8xf32>
    %cst_61 = arith.constant dense<0.000000e+00> : vector<8xf32>
    %349 = vector.multi_reduction <add>, %348, %cst_61 [1] : vector<8x8xf32> to vector<8xf32>
    %350 = vector.shape_cast %349 : vector<8xf32> to vector<8x1xf32>
    %351 = tpu.reciprocal %350 : vector<8x1xf32> -> vector<8x1xf32>
    %352 = vector.broadcast %351 : vector<8x1xf32> to vector<8x8xf32>
    %353 = arith.mulf %348, %352 : vector<8x8xf32>
    %cst_62 = arith.constant dense<0.000000e+00> : vector<8x8xf32>
    %354 = tpu.matmul %353, %318, %cst_62 {dimension_numbers = #tpu.dot_dimension_numbers<[1], [0], [0], [1], [0, 0, 1, 1], [], []>} : vector<8x8xf32>, vector<8x8xf32>, vector<8x8xf32> -> vector<8x8xf32>
    %355 = tpu.concatenate %237, %276, %315, %354 in 1 : vector<8x8xf32>, vector<8x8xf32>, vector<8x8xf32>, vector<8x8xf32> -> vector<8x32xf32>
    %356 = tpu.concatenate %198, %355 in 0 : vector<8x32xf32>, vector<8x32xf32> -> vector<16x32xf32>
    %cst_63 = arith.constant dense<0.000000e+00> : vector<16xf32>
    %357 = vector.multi_reduction <add>, %356, %cst_63 [1] : vector<16x32xf32> to vector<16xf32>
    %358 = vector.shape_cast %357 : vector<16xf32> to vector<16x1xf32>
    %cst_64 = arith.constant 3.200000e+01 : f32
    %359 = vector.broadcast %cst_64 : f32 to vector<16x1xf32>
    %360 = arith.divf %358, %359 : vector<16x1xf32>
    %361 = vector.broadcast %360 : vector<16x1xf32> to vector<16x32xf32>
    %362 = arith.subf %356, %361 : vector<16x32xf32>
    %363 = arith.mulf %362, %362 : vector<16x32xf32>
    %cst_65 = arith.constant dense<0.000000e+00> : vector<16xf32>
    %364 = vector.multi_reduction <add>, %363, %cst_65 [1] : vector<16x32xf32> to vector<16xf32>
    %365 = vector.shape_cast %364 : vector<16xf32> to vector<16x1xf32>
    %cst_66 = arith.constant 3.200000e+01 : f32
    %366 = vector.broadcast %cst_66 : f32 to vector<16x1xf32>
    %367 = arith.divf %365, %366 : vector<16x1xf32>
    %368 = vector.broadcast %360 : vector<16x1xf32> to vector<16x32xf32>
    %369 = arith.subf %356, %368 : vector<16x32xf32>
    %cst_67 = arith.constant 9.99999974E-6 : f32
    %370 = vector.broadcast %cst_67 : f32 to vector<16x1xf32>
    %371 = arith.addf %367, %370 : vector<16x1xf32>
    %372 = math.rsqrt %371 : vector<16x1xf32>
    %373 = vector.broadcast %372 : vector<16x1xf32> to vector<16x32xf32>
    %374 = arith.mulf %369, %373 : vector<16x32xf32>
    %c0_68 = arith.constant 0 : index
    %c0_69 = arith.constant 0 : index
    %375 = vector.load %arg4[%c0_68, %c0_69] : memref<1x32xf32, #tpu.memory_space<vmem>>, vector<1x32xf32>
    %376 = vector.broadcast %375 : vector<1x32xf32> to vector<16x32xf32>
    %377 = arith.mulf %374, %376 : vector<16x32xf32>
    %c0_70 = arith.constant 0 : index
    %c0_71 = arith.constant 0 : index
    %378 = vector.load %arg5[%c0_70, %c0_71] : memref<1x32xf32, #tpu.memory_space<vmem>>, vector<1x32xf32>
    %379 = vector.broadcast %378 : vector<1x32xf32> to vector<16x32xf32>
    %380 = arith.addf %377, %379 : vector<16x32xf32>
    %c0_72 = arith.constant 0 : index
    %c0_73 = arith.constant 0 : index
    %381 = vector.load %arg6[%c0_72, %c0_73] : memref<16x32xf32, #tpu.memory_space<vmem>>, vector<16x32xf32>
    tpu.vector_store %arg6[%c0_72, %c0_73], %380 {strides = array<i32>} : memref<16x32xf32, #tpu.memory_space<vmem>>, vector<16x32xf32>,
    return
  }
  func.func @transform_0(%arg0: i32) -> (i32, i32) {
    %c0_i32 = arith.constant 0 : i32
    %c0_i32_0 = arith.constant 0 : i32
    return %arg0, %c0_i32 : i32, i32
  }
  func.func @transform_1(%arg0: i32) -> (i32, i32) {
    %c0_i32 = arith.constant 0 : i32
    %c0_i32_0 = arith.constant 0 : i32
    %c0_i32_1 = arith.constant 0 : i32
    return %c0_i32, %c0_i32_0 : i32, i32
  }
  func.func @transform_2(%arg0: i32) -> (i32, i32) {
    %c0_i32 = arith.constant 0 : i32
    %c0_i32_0 = arith.constant 0 : i32
    %c0_i32_1 = arith.constant 0 : i32
    return %c0_i32, %c0_i32_0 : i32, i32
  }
  func.func @transform_3(%arg0: i32) -> (i32, i32) {
    %c0_i32 = arith.constant 0 : i32
    %c0_i32_0 = arith.constant 0 : i32
    %c0_i32_1 = arith.constant 0 : i32
    return %c0_i32, %c0_i32_0 : i32, i32
  }
  func.func @transform_4(%arg0: i32) -> (i32, i32) {
    %c0_i32 = arith.constant 0 : i32
    %c0_i32_0 = arith.constant 0 : i32
    %c0_i32_1 = arith.constant 0 : i32
    return %c0_i32, %c0_i32_0 : i32, i32
  }
  func.func @transform_5(%arg0: i32) -> (i32, i32) {
    %c0_i32 = arith.constant 0 : i32
    %c0_i32_0 = arith.constant 0 : i32
    return %arg0, %c0_i32 : i32, i32
  }
}

</mosaic_0001>

<bundles_post_ra>
// kernel: tpu_custom_call.1
= control target key start
LH: loop header
LB: loop body
LE: loop exit
PB: predicated region body
PF: predicated region fallthrough
CT: control target
= control target key end

     0   :  { %10 = vsyncpa [#allocation3], 0  ;;  %s3421_s0 = inlined_call_operand.hbm [shape: f32[32,32], index: 0, kind: input, shape index: {}]   ;;  %s3422_s1 = inlined_call_operand.hbm [shape: f32[32,96], index: 1, kind: input, shape index: {}]   ;;  %s3423_s2 = inlined_call_operand.hbm [shape: f32[32,32], index: 2, kind: input, shape index: {}]   ;;  %s3424_s3 = inlined_call_operand.vmem [shape: f32[1,32], index: 3, kind: input, shape index: {}]   ;;  %s3425_s4 = inlined_call_operand.vmem [shape: f32[1,32], index: 4, kind: input, shape index: {}]   ;;  %s3426_s5 = inlined_call_operand.hbm [shape: f32[32,32], index: 5, kind: output, shape index: {}]  }
   0x1   :  { %12 = vsyncpa [#allocation3 + $0x1], 0 }
   0x2   :  { %13 = vsyncpa [#allocation6], 0 }
   0x3   :  { %14 = vsyncpa [#allocation4], 0 }
   0x4   :  { %16 = vsyncpa [#allocation4 + $0x1], 0  ;;  %s2778_s18 = smov 0   ;;  %s2780_s19 = smov 0  }
   0x5   :  { %s2782_s20 = smov 0   ;;  %s2784_s21 = smov 0  }
   0x6 LB: > { %s2799_s22 = sadd.s32 4294967295, %s2714_s21   ;;  %s2214_s23 = sadd.s32 4294967294, %s2714_s21   ;;  %s2714_s21 = sphi %s2784_s21, %s3452_s21   ;;  %s2710_s20 = sphi %s2782_s20, %s3451_s20   ;;  %s2706_s19 = sphi %s2780_s19, %s3450_s19   ;;  %s2702_s18 = sphi %s2778_s18, %s3449_s18  }
   0x7   : > { %p42_p0 = scmp.ne.s32.totalorder %s2706_s19, %s2702_s18  ;;  %p3427_p1 = scmp.eq.s32.totalorder %s2799_s22, 0 }
   0x8   : > { %p156_p3 = scmp.eq.s32.totalorder %s2214_s23, 1  ;;  %p2215_p5 = scmp.ge.s32.totalorder %s2714_s21, 1 }
   0x9   : > { %p2808_p4 = por %p3427_p1, %p42_p0  ;;  %p163_p7 = scmp.lt.s32.totalorder %s2714_s21, 3 }
   0xa   : > { %p2813_p6 = por %p156_p3, %p42_p0  ;;  %s2716_s27 = smov [#allocation5]  }
   0xb   : > { %s3430_s24 = scalar_select %p2808_p4, 1, 0 }
   0xc   : > { %s3431_s25 = scalar_select %p2813_p6, 1, 0 }
   0xd   : > { %p2818_p8 = pnand %p2215_p5, %p163_p7  ;;  %s175_s28 = sshll.u32 %s2716_s27, 4  ;;  %s2822_s28 = int_to_ptr.vmem [resolvable:$true] %s175_s28 }
   0xe   : > { %s2717_s30 = smov [#allocation7]   ;;  %s2558_s9 = scalar_lea.hbm %s3422_s1, 512 }
   0xf   : > { %p2439_p9 = pneg %p2818_p8  ;;  %s188_s6 = sshll.u32 %s2717_s30, 4  ;;  %s2833_s6 = int_to_ptr.vmem [resolvable:$true] %s188_s6 }
  0x10   : > { %p2559_p12 = scmp.ne.s32.totalorder %s3422_s1, %s2558_s9  ;;  %p2565_p5 = scmp.lt.u32.totalorder %s2558_s9, %s3422_s1 }
  0x11   : > { %p2829_p11 = pnand %p2439_p9, %p3427_p1 }
  0x13   : > { %p2560_p13 = pneg %p2829_p11 }
  0x15   : > { %p2561_p0 = pnand %p2560_p13, %p2559_p12 }
  0x17   : > { %p2562_p3 = pneg %p2561_p0 }
  0x19   : > { %p2567_p7 = pnand %p2565_p5, %p2562_p3 }
  0x1b   : > { %2570 = shalt.err (!%p2567_p7)
}
  0x1c   : > { %s2571_s14 = scalar_lea.vmem %s2822_s28, 512  ;;  %p2579_p2 = scmp.lt.s32.totalorder %s2822_s28, %s2822_s28 }
  0x1d   : > { %p2572_p9 = scmp.ne.s32.totalorder %s2822_s28, %s2571_s14  ;;  %p2580_p12 = scmp.lt.s32.totalorder %s2571_s14, %s2571_s14 }
  0x1f   : > { %p2574_p10 = pnand %p2572_p9, %p2560_p13  ;;  %p2581_p0 = por %p2580_p12, %p2579_p2 }
  0x21   : > { %p2575_p1 = pneg %p2574_p10 }
  0x23   : > { %p2582_p6 = pnand %p2581_p0, %p2575_p1 }
  0x25   : > { %2585 = shalt.err (!%p2582_p6)
}
  0x26   : > { %s2718_s15 = smov 128   ;;  %s2719_s16 = smov 8  }
  0x27   : > { %2442 = dma.hbm_to_vmem [thread:$0]  (!%p2829_p11), %s3422_s1, 512, %s2822_s28, [#allocation6], %s2718_s15, %s2718_s15, %s2719_s16  }
  0x28   : > { %s2586_s7 = scalar_lea.hbm %s3423_s2, 512 }
  0x29   : > { %p2587_p1 = scmp.ne.s32.totalorder %s3423_s2, %s2586_s7  ;;  %p2593_p10 = scmp.lt.u32.totalorder %s2586_s7, %s3423_s2 }
  0x2b   : > { %p2589_p2 = pnand %p2587_p1, %p2560_p13 }
  0x2d   : > { %p2590_p6 = pneg %p2589_p2 }
  0x2f   : > { %p2595_p3 = pnand %p2593_p10, %p2590_p6 }
  0x31   : > { %2598 = shalt.err (!%p2595_p3)
}
  0x32   : > { %s2599_s28 = scalar_lea.vmem %s2833_s6, 512  ;;  %p2607_p12 = scmp.lt.s32.totalorder %s2833_s6, %s2833_s6 }
  0x33   : > { %p2600_p5 = scmp.ne.s32.totalorder %s2833_s6, %s2599_s28  ;;  %p2608_p0 = scmp.lt.s32.totalorder %s2599_s28, %s2599_s28 }
  0x35   : > { %p2602_p7 = pnand %p2600_p5, %p2560_p13  ;;  %p2609_p1 = por %p2608_p0, %p2607_p12 }
  0x37   : > { %p2603_p9 = pneg %p2602_p7 }
  0x39   : > { %p2610_p2 = pnand %p2609_p1, %p2603_p9 }
  0x3b   : > { %2613 = shalt.err (!%p2610_p2)
}
  0x3c   : > { %2445 = dma.hbm_to_vmem [thread:$0]  (!%p2829_p11), %s3423_s2, 512, %s2833_s6, [#allocation6], %s2718_s15, %s2718_s15, %s2719_s16  }
  0x3d   : > { %s2894_s29 = sadd.s32 1, %s2714_s21   ;;  %s29_s14 = sadd.s32 1, %s2710_s20 }
  0x3e   : > { %s26_s17 = ssub.s32 %s2714_s21, %s2894_s29  ;;  %p36_p13 = scmp.ne.s32.totalorder %s2710_s20, %s2706_s19 }
  0x3f   : > { %p27_p6 = scmp.eq.s32.totalorder %s26_s17, 0  ;;  %p37_p10 = scmp.eq.s32.totalorder %s2714_s21, 0 }
  0x40   : > { %p3434_p3 = scmp.eq.s32.totalorder %s2799_s22, 1  ;;  %p2456_p7 = scmp.lt.s32.totalorder %s2714_s21, 2 }
  0x41   : > { %s2910_s27 = scalar_select %p27_p6, %s2710_s20, %s29_s14  }
  0x42   : > { %p2904_p5 = por %p3434_p3, %p36_p13  ;;  %p38_p9 = por %p37_p10, %p36_p13 }
  0x43   : > { %s208_s30 = sand.u32 1, %s2710_s20   ;;  %s2263_s6 = sshll.u32 %s2714_s21, 8 }
  0x44   : > { %s3435_s23 = scalar_select %p2904_p5, 1, 0 }
  0x45   : > { %s2219_s7 = sshll.u32 %s208_s30, 4  ;;  %s2917_s10 = scalar_lea.hbm %s3421_s0, %s2263_s6 }
  0x46   : > { %s212_s11 = scalar_lea.vmem [#allocation2], %s2219_s7  ;;  %p2921_p11 = pnand %p2456_p7, %p38_p9 }
  0x47   : > { %s219_s28 = sshll.u32 %s212_s11, 4  ;;  %s2925_s13 = scalar_lea.sflag [#allocation3], %s208_s30  ;;  %s2919_s28 = int_to_ptr.vmem [resolvable:$true] %s219_s28 }
  0x48   : > { %s2614_s14 = scalar_lea.hbm %s2917_s10, 256  ;;  %p2616_p0 = pneg %p2921_p11 }
  0x49   : > { %p2615_p12 = scmp.ne.s32.totalorder %s2917_s10, %s2614_s14  ;;  %s2619_s6 = scalar_lea.hbm %s3421_s0, 512 }
  0x4a   : > { %p2620_p13 = scmp.lt.u32.totalorder %s2917_s10, %s3421_s0  ;;  %p2621_p6 = scmp.lt.u32.totalorder %s2619_s6, %s2614_s14 }
  0x4b   : > { %p2617_p1 = pnand %p2616_p0, %p2615_p12  ;;  %p2623_p3 = scmp.lt.u32.totalorder %s2614_s14, %s2917_s10 }
  0x4c   : > { %p2622_p10 = por %p2621_p6, %p2620_p13 }
  0x4d   : > { %p2618_p2 = pneg %p2617_p1 }
  0x4e   : > { %p2624_p7 = por %p2623_p3, %p2622_p10 }
  0x50   : > { %p2625_p9 = pnand %p2624_p7, %p2618_p2 }
  0x52   : > { %2628 = shalt.err (!%p2625_p9)
}
  0x53   : > { %s2629_s30 = scalar_lea.vmem %s2919_s28, 256  ;;  %s2720_s11 = smov [#allocation2]  }
  0x54   : > { %p2630_p12 = scmp.ne.s32.totalorder %s2919_s28, %s2629_s30  ;;  %s2634_s17 = sshll.u32 %s2720_s11, 4  ;;  %s2635_s17 = int_to_ptr.vmem [resolvable:$false] %s2634_s17 }
  0x55   : > { %s2636_s7 = scalar_lea.vmem %s2635_s17, 512  ;;  %p2637_p4 = scmp.lt.s32.totalorder %s2919_s28, %s2635_s17 }
  0x56   : > { %p2632_p1 = pnand %p2630_p12, %p2616_p0  ;;  %p2638_p13 = scmp.lt.s32.totalorder %s2636_s7, %s2629_s30 }
  0x58   : > { %p2633_p5 = pneg %p2632_p1  ;;  %p2639_p6 = por %p2638_p13, %p2637_p4 }
  0x5a   : > { %p2640_p10 = pnand %p2639_p6, %p2633_p5 }
  0x5c   : > { %2643 = shalt.err (!%p2640_p10)
}
  0x5d   : > { %2449 = dma.hbm_to_vmem [thread:$0]  (!%p2921_p11), %s2917_s10, 256, %s2919_s28, %s2925_s13, %s2718_s15, %s2718_s15, %s2719_s16  }
  0x5e   : > { %231 = sbr.rel (%p2818_p8) target bundleno = 1982 (0x7be), region = 40  ;;  %s2959_s14 = sand.u32 (!%p2818_p8), 1, %s2706_s19  }
  0x5f   : > { %s2223_s6 = sshll.u32 (!%p2818_p8), %s2959_s14, 4  ;;  %s234_s8 = scalar_lea.sflag (!%p2818_p8), [#allocation3], %s2959_s14 }
  0x60   : > { %s237_s12 = scalar_lea.vmem (!%p2818_p8), [#allocation2], %s2223_s6  ;;  %p3437_p4 = scmp.ne.s32.totalorder (!%p2818_p8), %s3430_s24, 0 }
  0x65   : > { %2689 = dma.done.wait (%p3437_p4), %s234_s8, 256  }
  0x66   : > { %2691 = vsyncadd (%p3437_p4), %s234_s8, 4294967040  ;;  %p3438_p5 = scmp.eq.s32.totalorder %s2799_s22, 0 }
  0x68   : > { %2693 = dma.done.wait (%p3438_p5), [#allocation6], 1024   ;;  %p3439_p8 = pmov %p3438_p5 }
  0x69   : > { %vm280_vm0 = vcmask 261120   ;;  %v276_v0 = vld [vmem:[#allocation5] sm:$0xff]  ;;  %v277_v1 = vld [vmem:[#allocation5 + $0x8] sm:$0xff]  ;;  %v278_v2 = vld [vmem:[#allocation5 + $0x10] sm:$0xff]  ;;  %v2721_v14 = vmov 0.0   ;;  %vm2722_vm1 = vmmov 0   ;;  %v449_v35 = vlaneseq }
  0x6a   : > { %2695 = vsyncadd (%p3439_p8), [#allocation6], 4294966272  ;;  %v2411_v3 = vpack.c.bf16 %v277_v1, %v276_v0  ;;  %v279_v4 = vld [vmem:[#allocation5 + $0x18] sm:$0xff]  ;;  %v274_v5 = vld [vmem:[%s237_s12] sm:$0xff]  ;;  %s2723_s24 = smov 96   ;;  %s2724_s26 = smov 120  }
  0x6b   : > { %v2415_v6 = vpack.c.bf16 %v279_v4, %v278_v2  ;;  %2317 = vmatprep.mubr.msk.f32.mxu0 %vm280_vm0, %v274_v5  ;;  %v364_v7 = vld [vmem:[#allocation7] sm:$0xff]  ;;  %v365_v8 = vld [vmem:[#allocation7 + $0x8] sm:$0xff]  ;;  %v366_v11 = vld [vmem:[#allocation7 + $0x10] sm:$0xff]  ;;  %s2725_s15 = smov 88   ;;  %s2726_s16 = smov 80   ;;  %vm509_vm2 = vcmask 64512  }
  0x6c   : > { %2412 = vmatprep.subr.bf16.mxu0 %v2411_v3  ;;  %v2419_v9 = vpack.c.bf16 %v365_v8, %v364_v7  ;;  %v275_v10 = vld [vmem:[%s237_s12 + $0x8] sm:$0xff]  ;;  %s2727_s10 = smov 112   ;;  %s2728_s28 = smov 72   ;;  %v3057_v36 = vshrl.u32 %v449_v35, 7  ;;  %vm474_vm4 = vcmask 7168   ;;  %vm486_vm6 = vcmask 15360  }
  0x6d   : > { %2414 = vmatpush3.bf16.msra.mxu0 %v2411_v3  ;;  %v367_v12 = vld [vmem:[#allocation7 + $0x18] sm:$0xff]  ;;  %s2729_s13 = smov 104   ;;  %s2730_s9 = smov 1   ;;  %vm498_vm8 = vcmask 31744   ;;  %vm1266_vm12 = vcmask 130048   ;;  %vm1268_vm13 = vcmask 195584  }
  0x6e   : > { %2416 = vmatprep.subr.bf16.mxu0 %v2415_v6  ;;  %2420 = vmatprep.subr.bf16.mxu1 %v2419_v9  ;;  %v2423_v13 = vpack.c.bf16 %v367_v12, %v366_v11  ;;  %s2731_s30 = smov 121   ;;  %s2732_s11 = smov 113   ;;  %v3060_v37 = vadd.s32 1, %v3057_v36 }
  0x6f   : > { %2422 = vmatpush3.bf16.msra.mxu1 %v2419_v9  ;;  %s2733_s17 = smov 105   ;;  %s2734_s7 = smov 97  }
  0x70   : > { %2424 = vmatprep.subr.bf16.mxu1 %v2423_v13  ;;  %v2231_v38 = vadd.s32 4294967288, %v3060_v37  ;;  %vm452_vm3 = vcmp.ge.s32.totalorder %v3060_v37, 8  ;;  %s2735_s8 = smov 2   ;;  %s2736_s12 = smov 122  }
  0x71   : > { %2418 = vmatpush3.bf16.msra.mxu0 %v2415_v6  ;;  %p3446_p0 = scmp.ne.s32.totalorder %s3435_s23, 0 }
  0x72   : > { %2331 = vmatprep.subr.mxu0 %v2721_v14  ;;  %v3065_v39 = vsel %vm452_vm3, %v2231_v38, %v3060_v37 }
  0x73   : > { %2426 = vmatpush3.bf16.msra.mxu1 %v2423_v13  ;;  %v455_v40 = vand.u32 1, %v3065_v39 }
  0x74   : > { %2318 = vmatmul.mubr.msk.f32.vlgmr.msra.gmra.mrb[0].mxu0 %vm280_vm0, %v275_v10  ;;  %2336 = vmatprep.subr.mxu1 %v2721_v14 }
  0x75   : > { %2333 = vmatprep.mubr.msk.f32.mxu0 %vm2722_vm1, %v2721_v14  ;;  %vm3070_vm5 = vcmp.eq.s32.totalorder %v455_v40, 1 }
 0x147   : > { %v2979_v15 = vpop.f32.mrb[0].mxu0 }
 0x148   : > { %v2981_v16 = vpop.f32.mrb[1].mxu0  ;;  %v363_v18 = vmul.f32 0.17677669, %v2979_v15 }
 0x149   : > { %507 = vrot.lane.b32.xlu0 %v2981_v16, %s2723_s24  ;;  %v362_v17 = vmul.f32 0.17677669, %v2981_v16 }
 0x14b   : > { %700 = vrot.lane.b32.xlu1 %v362_v17, %s2724_s26  ;;  %2328 = vmatprep.mubr.msk.f32.mxu1 %vm280_vm0, %v362_v17 }
 0x14c   : > { %2329 = vmatmul.mubr.msk.f32.vlgmr.msra.gmra.mrb[0].mxu1 %vm280_vm0, %v363_v18 }
 0x14d   : > { %702 = vrot.lane.b32.xlu0 %v2981_v16, %s2725_s15  ;;  %2338 = vmatprep.mubr.msk.f32.mxu1 %vm2722_vm1, %v2721_v14 }
 0x14f   : > { %896 = vrot.lane.b32.xlu1 %v2981_v16, %s2726_s16 }
 0x151   : > { %894 = vrot.lane.b32.xlu0 %v362_v17, %s2727_s10 }
 0x153   : > { %1090 = vrot.lane.b32.xlu1 %v2981_v16, %s2728_s28 }
 0x155   : > { %1088 = vrot.lane.b32.xlu0 %v362_v17, %s2729_s13 }
 0x157   : > { %1301 = vrot.lane.b32.xlu1 %v2979_v15, %s2723_s24  ;;  %s2737_s24 = smov 4  }
 0x159   : > { %1495 = vrot.lane.b32.xlu0 %v2979_v15, %s2725_s15  ;;  %s2739_s15 = smov 56  }
 0x15b   : > { %1493 = vrot.lane.b32.xlu1 %v363_v18, %s2724_s26 }
 0x15d   : > { %1689 = vrot.lane.b32.xlu0 %v2979_v15, %s2726_s16  ;;  %s2740_s16 = smov 64  }
 0x15f   : > { %1687 = vrot.lane.b32.xlu1 %v363_v18, %s2727_s10 }
 0x161   : > { %1883 = vrot.lane.b32.xlu0 %v2979_v15, %s2728_s28  ;;  %s2742_s28 = smov 40  }
 0x163   : > { %1881 = vrot.lane.b32.xlu1 %v363_v18, %s2729_s13 }
 0x1bb   : > { %v508_v19 = vpop.permute.xlu0 %507 }
 0x1bc   : > { %2332 = vmatpush3.xpose.msk.msra.mxu0 %vm509_vm2, %v508_v19 }
 0x1bd   : > { %v701_v20 = vpop.permute.xlu1 %700  ;;  %2341 = vmatprep.subr.mxu0 %v2721_v14 }
 0x1bf   : > { %v703_v21 = vpop.permute.xlu0 %702  ;;  %2334 = vmatmul.mubr.msk.f32.vlgmr.msra.gmra.mrb[2].mxu0 %vm509_vm2, %v362_v17 }
 0x1c0   : > { %2342 = vmatpush3.xpose.msk.msra.mxu0 %vm509_vm2, %v703_v21  ;;  %2343 = vmatprep.mubr.msk.f32.mxu0 %vm2722_vm1, %v2721_v14 }
 0x1c1   : > { %v897_v22 = vpop.permute.xlu1 %896  ;;  %2351 = vmatprep.subr.mxu0 %v2721_v14 }
 0x1c3   : > { %v895_v23 = vpop.permute.xlu0 %894  ;;  %2344 = vmatmul.mubr.msk.f32.vlgmr.msra.gmra.mrb[4].mxu0 %vm509_vm2, %v701_v20 }
 0x1c4   : > { %2352 = vmatpush3.xpose.msk.msra.mxu0 %vm509_vm2, %v897_v22  ;;  %2353 = vmatprep.mubr.msk.f32.mxu0 %vm2722_vm1, %v2721_v14 }
 0x1c5   : > { %v1091_v24 = vpop.permute.xlu1 %1090  ;;  %2361 = vmatprep.subr.mxu0 %v2721_v14 }
 0x1c7   : > { %v1089_v25 = vpop.permute.xlu0 %1088  ;;  %2354 = vmatmul.mubr.msk.f32.vlgmr.msra.gmra.mrb[6].mxu0 %vm509_vm2, %v895_v23 }
 0x1c8   : > { %2362 = vmatpush3.xpose.msk.msra.mxu0 %vm509_vm2, %v1091_v24  ;;  %2363 = vmatprep.mubr.msk.f32.mxu0 %vm2722_vm1, %v2721_v14 }
 0x1c9   : > { %v1302_v26 = vpop.permute.xlu1 %1301  ;;  %2371 = vmatprep.subr.mxu0 %v2721_v14 }
 0x1cb   : > { %v1496_v27 = vpop.permute.xlu0 %1495  ;;  %2364 = vmatmul.mubr.msk.f32.vlgmr.msra.gmra.mrb[8].mxu0 %vm509_vm2, %v1089_v25 }
 0x1cc   : > { %2372 = vmatpush3.xpose.msk.msra.mxu0 %vm509_vm2, %v1302_v26  ;;  %2373 = vmatprep.mubr.msk.f32.mxu0 %vm2722_vm1, %v2721_v14 }
 0x1cd   : > { %2381 = vmatprep.subr.mxu0 %v2721_v14  ;;  %v1494_v28 = vpop.permute.xlu1 %1493 }
 0x1cf   : > { %2374 = vmatmul.mubr.msk.f32.vlgmr.msra.gmra.mrb[10].mxu0 %vm509_vm2, %v363_v18  ;;  %v1690_v29 = vpop.permute.xlu0 %1689 }
 0x1d0   : > { %2382 = vmatpush3.xpose.msk.msra.mxu0 %vm509_vm2, %v1496_v27  ;;  %2383 = vmatprep.mubr.msk.f32.mxu0 %vm2722_vm1, %v2721_v14 }
 0x1d1   : > { %2391 = vmatprep.subr.mxu0 %v2721_v14  ;;  %v1688_v30 = vpop.permute.xlu1 %1687 }
 0x1d3   : > { %2384 = vmatmul.mubr.msk.f32.vlgmr.msra.gmra.mrb[12].mxu0 %vm509_vm2, %v1494_v28  ;;  %v1884_v31 = vpop.permute.xlu0 %1883 }
 0x1d4   : > { %2392 = vmatpush3.xpose.msk.msra.mxu0 %vm509_vm2, %v1690_v29  ;;  %2393 = vmatprep.mubr.msk.f32.mxu0 %vm2722_vm1, %v2721_v14  ;;  %v457_v29 = vshra.s32 %v3065_v39, 1 }
 0x1d5   : > { %2401 = vmatprep.subr.mxu0 %v2721_v14  ;;  %v1882_v32 = vpop.permute.xlu1 %1881 }
 0x1d7   : > { %2394 = vmatmul.mubr.msk.f32.vlgmr.msra.gmra.mrb[14].mxu0 %vm509_vm2, %v1688_v30  ;;  %v458_v30 = vand.u32 1, %v457_v29 }
 0x1d8   : > { %2402 = vmatpush3.xpose.msk.msra.mxu0 %vm509_vm2, %v1884_v31  ;;  %2403 = vmatprep.mubr.msk.f32.mxu0 %vm2722_vm1, %v2721_v14 }
 0x1d9   : > { %vm459_vm7 = vcmp.eq.s32.totalorder %v458_v30, 1 }
 0x1db   : > { %2404 = vmatmul.mubr.msk.f32.vlgmr.msra.gmra.mrb[16].mxu0 %vm509_vm2, %v1882_v32 }
 0x21f   : > { %v3040_v33 = vpop.f32.mrb[0].mxu1 }
 0x220   : > { %v440_v34 = vpop.f32.mrb[1].mxu1 }
 0x221   : > { %471 = vrot.lane.b32.xlu1 %v440_v34, %s2730_s9  ;;  %468 = vrot.lane.b32.xlu0 %v440_v34, %s2731_s30 }
 0x225   : > { %675 = vrot.lane.b32.xlu1 %v440_v34, %s2724_s26  ;;  %671 = vrot.lane.b32.xlu0 %v440_v34, %s2732_s11 }
 0x229   : > { %869 = vrot.lane.b32.xlu1 %v440_v34, %s2727_s10  ;;  %865 = vrot.lane.b32.xlu0 %v440_v34, %s2733_s17 }
 0x22d   : > { %1063 = vrot.lane.b32.xlu1 %v440_v34, %s2729_s13  ;;  %1059 = vrot.lane.b32.xlu0 %v440_v34, %s2734_s7 }
 0x231   : > { %1274 = vrot.lane.b32.xlu1 %v3040_v33, %s2730_s9  ;;  %1271 = vrot.lane.b32.xlu0 %v3040_v33, %s2731_s30  ;;  %s2744_s9 = smov 16   ;;  %s2745_s30 = smov 24  }
 0x235   : > { %1468 = vrot.lane.b32.xlu1 %v3040_v33, %s2724_s26  ;;  %1464 = vrot.lane.b32.xlu0 %v3040_v33, %s2732_s11  ;;  %s2738_s26 = smov 124  }
 0x239   : > { %1662 = vrot.lane.b32.xlu1 %v3040_v33, %s2727_s10  ;;  %1658 = vrot.lane.b32.xlu0 %v3040_v33, %s2733_s17  ;;  %s2741_s10 = smov 48  }
 0x23d   : > { %1856 = vrot.lane.b32.xlu1 %v3040_v33, %s2729_s13  ;;  %1852 = vrot.lane.b32.xlu0 %v3040_v33, %s2734_s7  ;;  %s2743_s13 = smov 8  }
 0x292   : > { %v3068_v41 = vpop.f32.mrb[2].mxu0 }
 0x293   : > { %v2335_v42 = vpop.f32.mrb[3].mxu0  ;;  %v472_v43 = vpop.permute.xlu1 %471 }
 0x294   : > { %v469_v45 = vpop.permute.xlu0 %468 }
 0x295   : > { %v475_v46 = vsel %vm474_vm4, %v469_v45, %v472_v43 }
 0x296   : > { %v3075_v47 = vpop.f32.mrb[4].mxu0  ;;  %v3079_v48 = vsel %vm3070_vm5, %v475_v46, %v440_v34 }
 0x297   : > { %483 = vrot.lane.b32.xlu1 %v3079_v48, %s2735_s8  ;;  %480 = vrot.lane.b32.xlu0 %v3079_v48, %s2736_s12  ;;  %v2345_v49 = vpop.f32.mrb[5].mxu0  ;;  %v676_v50 = vpop.permute.xlu1 %675 }
 0x298   : > { %v672_v51 = vpop.permute.xlu0 %671 }
 0x299   : > { %v674_v52 = vsel %vm474_vm4, %v672_v51, %v469_v45 }
 0x29a   : > { %v3086_v53 = vpop.f32.mrb[6].mxu0  ;;  %v3090_v54 = vsel %vm3070_vm5, %v674_v52, %v676_v50 }
 0x29b   : > { %683 = vrot.lane.b32.xlu1 %v3090_v54, %s2735_s8  ;;  %680 = vrot.lane.b32.xlu0 %v3090_v54, %s2736_s12  ;;  %v2355_v55 = vpop.f32.mrb[7].mxu0  ;;  %v870_v56 = vpop.permute.xlu1 %869 }
 0x29c   : > { %v866_v57 = vpop.permute.xlu0 %865 }
 0x29d   : > { %v868_v58 = vsel %vm474_vm4, %v866_v57, %v672_v51 }
 0x29e   : > { %v3097_v59 = vpop.f32.mrb[8].mxu0  ;;  %v872_v60 = vsel %vm3070_vm5, %v868_v58, %v870_v56 }
 0x29f   : > { %877 = vrot.lane.b32.xlu1 %v872_v60, %s2735_s8  ;;  %874 = vrot.lane.b32.xlu0 %v872_v60, %s2736_s12  ;;  %v2365_v61 = vpop.f32.mrb[9].mxu0  ;;  %v1064_v62 = vpop.permute.xlu1 %1063 }
 0x2a0   : > { %v1060_v63 = vpop.permute.xlu0 %1059 }
 0x2a1   : > { %v1062_v0 = vsel %vm474_vm4, %v1060_v63, %v866_v57 }
 0x2a2   : > { %v3104_v1 = vpop.f32.mrb[10].mxu0  ;;  %v1066_v2 = vsel %vm3070_vm5, %v1062_v0, %v1064_v62 }
 0x2a3   : > { %1071 = vrot.lane.b32.xlu1 %v1066_v2, %s2735_s8  ;;  %1068 = vrot.lane.b32.xlu0 %v1066_v2, %s2736_s12  ;;  %v2375_v3 = vpop.f32.mrb[11].mxu0  ;;  %v1275_v4 = vpop.permute.xlu1 %1274 }
 0x2a4   : > { %v1272_v5 = vpop.permute.xlu0 %1271 }
 0x2a5   : > { %v1277_v6 = vsel %vm474_vm4, %v1272_v5, %v1275_v4 }
 0x2a6   : > { %v3111_v7 = vpop.f32.mrb[12].mxu0  ;;  %v1278_v8 = vsel %vm3070_vm5, %v1277_v6, %v3040_v33 }
 0x2a7   : > { %1283 = vrot.lane.b32.xlu1 %v1278_v8, %s2735_s8  ;;  %1280 = vrot.lane.b32.xlu0 %v1278_v8, %s2736_s12  ;;  %v2385_v9 = vpop.f32.mrb[13].mxu0  ;;  %v1469_v10 = vpop.permute.xlu1 %1468 }
 0x2a8   : > { %v1465_v11 = vpop.permute.xlu0 %1464 }
 0x2a9   : > { %v1467_v12 = vsel %vm474_vm4, %v1465_v11, %v1272_v5 }
 0x2aa   : > { %v3119_v13 = vpop.f32.mrb[14].mxu0  ;;  %v1471_v17 = vsel %vm3070_vm5, %v1467_v12, %v1469_v10  ;;  %v460_v12 = vshra.s32 %v3065_v39, 2 }
 0x2ab   : > { %1476 = vrot.lane.b32.xlu1 %v1471_v17, %s2735_s8  ;;  %1473 = vrot.lane.b32.xlu0 %v1471_v17, %s2736_s12  ;;  %v2395_v18 = vpop.f32.mrb[15].mxu0  ;;  %v1663_v19 = vpop.permute.xlu1 %1662 }
 0x2ac   : > { %v1659_v20 = vpop.permute.xlu0 %1658  ;;  %v461_v18 = vand.u32 1, %v460_v12 }
 0x2ad   : > { %v1661_v21 = vsel %vm474_vm4, %v1659_v20, %v1465_v11 }
 0x2ae   : > { %v3126_v22 = vpop.f32.mrb[16].mxu0  ;;  %v1665_v23 = vsel %vm3070_vm5, %v1661_v21, %v1663_v19  ;;  %vm462_vm9 = vcmp.eq.s32.totalorder %v461_v18, 1 }
 0x2af   : > { %1670 = vrot.lane.b32.xlu1 %v1665_v23, %s2735_s8  ;;  %1667 = vrot.lane.b32.xlu0 %v1665_v23, %s2736_s12  ;;  %v2405_v24 = vpop.f32.mrb[17].mxu0  ;;  %v1857_v25 = vpop.permute.xlu1 %1856 }
 0x2b0   : > { %v1853_v26 = vpop.permute.xlu0 %1852 }
 0x2b1   : > { %v1855_v27 = vsel %vm474_vm4, %v1853_v26, %v1659_v20 }
 0x2b2   : > { %v1859_v28 = vsel %vm3070_vm5, %v1855_v27, %v1857_v25  ;;  %v464_v25 = vand.u32 127, %v449_v35 }
 0x2b3   : > { %1864 = vrot.lane.b32.xlu1 %v1859_v28, %s2735_s8  ;;  %1861 = vrot.lane.b32.xlu0 %v1859_v28, %s2736_s12  ;;  %s271_s12 = scalar_lea.vmem [#allocation8], %s2223_s6  ;;  %s2109_s6 = scalar_lea.sflag [#allocation4], %s2959_s14 }
 0x2b4   : > { %vm3200_vm10 = vcmp.eq.s32.totalorder %v464_v25, %v3060_v37  ;;  %vm3206_vm11 = vcmp.le.s32.totalorder %v464_v25, %v3057_v36 }
 0x309   : > { %v484_v31 = vpop.permute.xlu1 %483  ;;  %v481_v32 = vpop.permute.xlu0 %480 }
 0x30a   : > { %v487_v33 = vsel %vm486_vm6, %v481_v32, %v484_v31 }
 0x30b   : > { %v3141_v34 = vsel %vm459_vm7, %v487_v33, %v3079_v48 }
 0x30c   : > { %495 = vrot.lane.b32.xlu1 %v3141_v34, %s2737_s24 }
 0x30d   : > { %v684_v38 = vpop.permute.xlu1 %683  ;;  %v681_v40 = vpop.permute.xlu0 %680 }
 0x30e   : > { %v686_v42 = vsel %vm486_vm6, %v681_v40, %v684_v38 }
 0x30f   : > { %v3148_v43 = vsel %vm459_vm7, %v686_v42, %v3090_v54 }
 0x310   : > { %692 = vrot.lane.b32.xlu1 %v3148_v43, %s2737_s24 }
 0x311   : > { %v878_v44 = vpop.permute.xlu1 %877  ;;  %v875_v45 = vpop.permute.xlu0 %874 }
 0x312   : > { %v880_v46 = vsel %vm486_vm6, %v875_v45, %v878_v44 }
 0x313   : > { %v3154_v48 = vsel %vm459_vm7, %v880_v46, %v872_v60 }
 0x314   : > { %886 = vrot.lane.b32.xlu1 %v3154_v48, %s2737_s24 }
 0x315   : > { %v1072_v49 = vpop.permute.xlu1 %1071  ;;  %v1069_v50 = vpop.permute.xlu0 %1068 }
 0x316   : > { %v1074_v51 = vsel %vm486_vm6, %v1069_v50, %v1072_v49 }
 0x317   : > { %v3160_v52 = vsel %vm459_vm7, %v1074_v51, %v1066_v2 }
 0x318   : > { %1080 = vrot.lane.b32.xlu1 %v3160_v52, %s2737_s24 }
 0x319   : > { %v1284_v54 = vpop.permute.xlu1 %1283  ;;  %v1281_v55 = vpop.permute.xlu0 %1280 }
 0x31a   : > { %v1286_v56 = vsel %vm486_vm6, %v1281_v55, %v1284_v54 }
 0x31b   : > { %v1287_v57 = vsel %vm459_vm7, %v1286_v56, %v1278_v8 }
 0x31c   : > { %1292 = vrot.lane.b32.xlu1 %v1287_v57, %s2737_s24  ;;  %1289 = vrot.lane.b32.xlu0 %v1287_v57, %s2738_s26 }
 0x31d   : > { %v1477_v58 = vpop.permute.xlu1 %1476  ;;  %v1474_v60 = vpop.permute.xlu0 %1473 }
 0x31e   : > { %v1479_v61 = vsel %vm486_vm6, %v1474_v60, %v1477_v58 }
 0x31f   : > { %v3169_v62 = vsel %vm459_vm7, %v1479_v61, %v1471_v17 }
 0x320   : > { %492 = vrot.lane.b32.xlu0 %v3141_v34, %s2738_s26  ;;  %1485 = vrot.lane.b32.xlu1 %v3169_v62, %s2737_s24 }
 0x321   : > { %v1671_v63 = vpop.permute.xlu1 %1670  ;;  %v1668_v0 = vpop.permute.xlu0 %1667 }
 0x322   : > { %v1673_v2 = vsel %vm486_vm6, %v1668_v0, %v1671_v63 }
 0x323   : > { %v3176_v3 = vsel %vm459_vm7, %v1673_v2, %v1665_v23 }
 0x324   : > { %689 = vrot.lane.b32.xlu0 %v3148_v43, %s2738_s26  ;;  %1679 = vrot.lane.b32.xlu1 %v3176_v3, %s2737_s24 }
 0x325   : > { %v1865_v4 = vpop.permute.xlu1 %1864  ;;  %v1862_v5 = vpop.permute.xlu0 %1861 }
 0x326   : > { %v1867_v6 = vsel %vm486_vm6, %v1862_v5, %v1865_v4 }
 0x327   : > { %v3183_v8 = vsel %vm459_vm7, %v1867_v6, %v1859_v28 }
 0x328   : > { %883 = vrot.lane.b32.xlu0 %v3154_v48, %s2738_s26  ;;  %1873 = vrot.lane.b32.xlu1 %v3183_v8, %s2737_s24  ;;  %s2264_s24 = sshll.u32 %s2799_s22, 8  ;;  %s2746_s22 = smov [#allocation8]  }
 0x32c   : > { %1077 = vrot.lane.b32.xlu0 %v3160_v52, %s2738_s26 }
 0x330   : > { %1482 = vrot.lane.b32.xlu0 %v3169_v62, %s2738_s26 }
 0x334   : > { %1676 = vrot.lane.b32.xlu0 %v3176_v3, %s2738_s26 }
 0x338   : > { %1870 = vrot.lane.b32.xlu0 %v3183_v8, %s2738_s26  ;;  %s2122_s26 = sshll.u32 %s271_s12, 4  ;;  %s3375_s26 = int_to_ptr.vmem [resolvable:$true] %s2122_s26 }
 0x37e   : > { %v496_v9 = vpop.permute.xlu1 %495 }
 0x382   : > { %v693_v10 = vpop.permute.xlu1 %692 }
 0x386   : > { %v887_v11 = vpop.permute.xlu1 %886 }
 0x38a   : > { %v1081_v17 = vpop.permute.xlu1 %1080 }
 0x38e   : > { %v1293_v19 = vpop.permute.xlu1 %1292  ;;  %v1290_v20 = vpop.permute.xlu0 %1289 }
 0x38f   : > { %v1295_v21 = vsel %vm498_vm8, %v1290_v20, %v1293_v19 }
 0x390   : > { %v1296_v23 = vsel %vm462_vm9, %v1295_v21, %v1287_v57 }
 0x391   : > { %v1297_v28 = vrot.slane %v1296_v23, 1 }
 0x392   : > { %v493_v24 = vpop.permute.xlu0 %492  ;;  %v1486_v46 = vpop.permute.xlu1 %1485 }
 0x393   : > { %v499_v26 = vsel %vm498_vm8, %v493_v24, %v496_v9  ;;  %v1298_v40 = vsel %vm3200_vm10, 0.0, %v1297_v28 }
 0x394   : > { %v502_v27 = vsel %vm462_vm9, %v499_v26, %v3141_v34  ;;  %v1299_v45 = vsel %vm3206_vm11, %v1296_v23, %v1298_v40 }
 0x395   : > { %v503_v39 = vrot.slane %v502_v27, 1  ;;  %v1374_v51 = vadd.f32 %v3104_v1, %v1299_v45 }
 0x396   : > { %v690_v29 = vpop.permute.xlu0 %689  ;;  %v1680_v58 = vpop.permute.xlu1 %1679 }
 0x397   : > { %v695_v31 = vsel %vm498_vm8, %v690_v29, %v693_v10  ;;  %v504_v35 = vsel %vm3200_vm10, 0.0, %v503_v39  ;;  %v1377_v57 = vsel %vm509_vm2, %v1374_v51, -inf }
 0x398   : > { %v696_v33 = vsel %vm462_vm9, %v695_v31, %v3148_v43  ;;  %v505_v34 = vsel %vm3206_vm11, %v502_v27, %v504_v35 }
 0x399   : > { %v697_v37 = vrot.slane %v696_v33, 1  ;;  %v3217_v38 = vadd.f32 %v3068_v41, %v505_v34 }
 0x39a   : > { %v884_v36 = vpop.permute.xlu0 %883  ;;  %v1874_v10 = vpop.permute.xlu1 %1873 }
 0x39b   : > { %v584_v42 = vsel %vm509_vm2, %v3217_v38, -inf  ;;  %v698_v44 = vsel %vm3200_vm10, 0.0, %v697_v37  ;;  %v889_v55 = vsel %vm498_vm8, %v884_v36, %v887_v11 }
 0x39c   : > { %585 = vmax.xlane.f32.xlu0 %v584_v42  ;;  %v699_v43 = vsel %vm3206_vm11, %v696_v33, %v698_v44  ;;  %v890_v61 = vsel %vm462_vm9, %v889_v55, %v3154_v48 }
 0x39d   : > { %v3230_v41 = vadd.f32 %v3075_v47, %v699_v43 }
 0x39e   : > { %v1078_v49 = vpop.permute.xlu0 %1077 }
 0x39f   : > { %v778_v50 = vsel %vm509_vm2, %v3230_v41, -inf  ;;  %v1083_v1 = vsel %vm498_vm8, %v1078_v49, %v1081_v17 }
 0x3a0   : > { %779 = vmax.xlane.f32.xlu1 %v778_v50  ;;  %v1084_v48 = vsel %vm462_vm9, %v1083_v1, %v3160_v52 }
 0x3a2   : > { %v1483_v54 = vpop.permute.xlu0 %1482 }
 0x3a3   : > { %v1488_v56 = vsel %vm498_vm8, %v1483_v54, %v1486_v46 }
 0x3a4   : > { %v1489_v47 = vsel %vm462_vm9, %v1488_v56, %v3169_v62  ;;  %1378 = vmax.xlane.f32.xlu1 %v1377_v57  ;;  %v891_v62 = vrot.slane %v890_v61, 1 }
 0x3a5   : > { %v1490_v60 = vrot.slane %v1489_v47, 1 }
 0x3a6   : > { %v1677_v63 = vpop.permute.xlu0 %1676  ;;  %v892_v52 = vsel %vm3200_vm10, 0.0, %v891_v62 }
 0x3a7   : > { %v1682_v0 = vsel %vm498_vm8, %v1677_v63, %v1680_v58  ;;  %v1491_v2 = vsel %vm3200_vm10, 0.0, %v1490_v60  ;;  %v893_v18 = vsel %vm3206_vm11, %v890_v61, %v892_v52 }
 0x3a8   : > { %v1683_v4 = vsel %vm462_vm9, %v1682_v0, %v3176_v3  ;;  %v1492_v5 = vsel %vm3206_vm11, %v1489_v47, %v1491_v2  ;;  %v969_v28 = vadd.f32 %v3086_v53, %v893_v18 }
 0x3a9   : > { %v1684_v6 = vrot.slane %v1683_v4, 1  ;;  %v1568_v9 = vadd.f32 %v3111_v7, %v1492_v5  ;;  %v1085_v7 = vrot.slane %v1084_v48, 1 }
 0x3aa   : > { %v1871_v11 = vpop.permute.xlu0 %1870  ;;  %v972_v29 = vsel %vm509_vm2, %v969_v28, -inf }
 0x3ab   : > { %v1876_v12 = vsel %vm498_vm8, %v1871_v11, %v1874_v10  ;;  %v1571_v17 = vsel %vm509_vm2, %v1568_v9, -inf  ;;  %v1685_v19 = vsel %vm3200_vm10, 0.0, %v1684_v6 }
 0x3ac   : > { %v1877_v3 = vsel %vm462_vm9, %v1876_v12, %v3183_v8  ;;  %1572 = vmax.xlane.f32.xlu0 %v1571_v17  ;;  %v1686_v20 = vsel %vm3206_vm11, %v1683_v4, %v1685_v19 }
 0x3ad   : > { %v1878_v21 = vrot.slane %v1877_v3, 1  ;;  %v1762_v23 = vadd.f32 %v3119_v13, %v1686_v20  ;;  %v1086_v13 = vsel %vm3200_vm10, 0.0, %v1085_v7 }
 0x3ae   : > { %v1087_v39 = vsel %vm3206_vm11, %v1084_v48, %v1086_v13 }
 0x3af   : > { %v1765_v24 = vsel %vm509_vm2, %v1762_v23, -inf  ;;  %v1879_v25 = vsel %vm3200_vm10, 0.0, %v1878_v21  ;;  %v3280_v31 = vadd.f32 %v3097_v59, %v1087_v39 }
 0x3b0   : > { %1766 = vmax.xlane.f32.xlu1 %v1765_v24  ;;  %v1880_v8 = vsel %vm3206_vm11, %v1877_v3, %v1879_v25 }
 0x3b1   : > { %v1956_v26 = vadd.f32 %v3126_v22, %v1880_v8  ;;  %v1166_v22 = vsel %vm509_vm2, %v3280_v31, -inf }
 0x3b3   : > { %v1959_v27 = vsel %vm509_vm2, %v1956_v26, -inf }
 0x3b4   : > { %1960 = vmax.xlane.f32.xlu0 %v1959_v27 }
 0x3b8   : > { %973 = vmax.xlane.f32.xlu0 %v972_v29 }
 0x3bc   : > { %1167 = vmax.xlane.f32.xlu0 %v1166_v22 }
 0x3c1   : > { %789 = vrot.lane.b32.xlu1 %v2981_v16, %s2739_s15 }
 0x3d2   : > { %595 = vrot.lane.b32.xlu0 %v2981_v16, %s2740_s16 }
 0x429   : > { %v586_v33 = vpop.xlane.xlu0 %585 }
 0x42a   : > { %v587_v45 = vsub.f32 %v3217_v38, %v586_v33 }
 0x42d   : > { %v780_v53 = vpop.xlane.xlu1 %779 }
 0x42e   : > { %v781_v59 = vsub.f32 %v3230_v41, %v780_v53  ;;  %v588_v41 = vmul.f32 1.442695, %v587_v45 }
 0x430   : > { %v782_v40 = vmul.f32 1.442695, %v781_v59 }
 0x431   : > { %v1379_v30 = vpop.xlane.xlu1 %1378 }
 0x432   : > { %v1380_v32 = vsub.f32 %v1374_v51, %v1379_v30 }
 0x434   : > { %v1381_v35 = vmul.f32 1.442695, %v1380_v32 }
 0x436   : > { %2522 = vpow2.f32 %v1381_v35 }
 0x439   : > { %v1573_v34 = vpop.xlane.xlu0 %1572 }
 0x43a   : > { %v1574_v37 = vsub.f32 %v1568_v9, %v1573_v34 }
 0x43c   : > { %v1575_v36 = vmul.f32 1.442695, %v1574_v37 }
 0x43d   : > { %v1767_v42 = vpop.xlane.xlu1 %1766 }
 0x43e   : > { %2524 = vpow2.f32 %v1575_v36  ;;  %v1768_v44 = vsub.f32 %v1762_v23, %v1767_v42 }
 0x43f   : > { %2526 = vpow2.f32 %v782_v40 }
 0x440   : > { %v3289_v43 = vpop.eup %2522  ;;  %v1769_v46 = vmul.f32 1.442695, %v1768_v44 }
 0x441   : > { %v1961_v49 = vpop.xlane.xlu0 %1960  ;;  %v1383_v50 = vsel %vm509_vm2, %v3289_v43, 0.0  ;;  %v790_v17 = vpop.permute.xlu1 %789 }
 0x442   : > { %2528 = vpow2.f32 %v1769_v46  ;;  %v1962_v51 = vsub.f32 %v1956_v26, %v1961_v49  ;;  %1384 = vadd.xlane.f32.xlu1 %v1383_v50 }
 0x444   : > { %v1963_v54 = vmul.f32 1.442695, %v1962_v51 }
 0x445   : > { %v974_v55 = vpop.xlane.xlu0 %973 }
 0x446   : > { %2530 = vpow2.f32 %v1963_v54  ;;  %v975_v56 = vsub.f32 %v969_v28, %v974_v55 }
 0x447   : > { %2532 = vpow2.f32 %v588_v41 }
 0x448   : > { %v3294_v57 = vpop.eup %2524  ;;  %v976_v58 = vmul.f32 1.442695, %v975_v56 }
 0x449   : > { %v1168_v47 = vpop.xlane.xlu0 %1167  ;;  %v1577_v38 = vsel %vm509_vm2, %v3294_v57, 0.0  ;;  %v2527_v60 = vpop.eup %2526 }
 0x44a   : > { %1578 = vadd.xlane.f32.xlu0 %v1577_v38  ;;  %2534 = vpow2.f32 %v976_v58  ;;  %v784_v0 = vsel %vm509_vm2, %v2527_v60, 0.0  ;;  %v1169_v10 = vsub.f32 %v3280_v31, %v1168_v47 }
 0x44c   : > { %v3298_v61 = vpop.eup %2528  ;;  %v1170_v48 = vmul.f32 1.442695, %v1169_v10 }
 0x44d   : > { %v596_v63 = vpop.permute.xlu0 %595  ;;  %v1771_v1 = vsel %vm509_vm2, %v3298_v61, 0.0 }
 0x44e   : > { %1772 = vadd.xlane.f32.xlu1 %v1771_v1  ;;  %785 = vadd.xlane.f32.xlu0 %v784_v0  ;;  %2536 = vpow2.f32 %v1170_v48 }
 0x44f   : > { %2337 = vmatpush3.msra.mxu1 %v596_v63 }
 0x450   : > { %v3303_v2 = vpop.eup %2530  ;;  %2346 = vmatprep.subr.mxu1 %v2721_v14 }
 0x451   : > { %v1965_v4 = vsel %vm509_vm2, %v3303_v2, 0.0  ;;  %v2533_v5 = vpop.eup %2532 }
 0x452   : > { %1966 = vadd.xlane.f32.xlu1 %v1965_v4  ;;  %v590_v62 = vsel %vm509_vm2, %v2533_v5, 0.0 }
 0x454   : > { %v2535_v6 = vpop.eup %2534 }
 0x455   : > { %v978_v9 = vsel %vm509_vm2, %v2535_v6, 0.0 }
 0x456   : > { %591 = vadd.xlane.f32.xlu1 %v590_v62 }
 0x458   : > { %v2537_v11 = vpop.eup %2536 }
 0x459   : > { %v1172_v12 = vsel %vm509_vm2, %v2537_v11, 0.0 }
 0x45a   : > { %979 = vadd.xlane.f32.xlu1 %v978_v9 }
 0x464   : > { %983 = vrot.lane.b32.xlu0 %v2981_v16, %s2741_s10 }
 0x46b   : > { %1177 = vrot.lane.b32.xlu1 %v2981_v16, %s2742_s28 }
 0x46f   : > { %1582 = vrot.lane.b32.xlu1 %v2979_v15, %s2739_s15 }
 0x473   : > { %1970 = vrot.lane.b32.xlu1 %v2979_v15, %s2742_s28  ;;  %s2644_s28 = scalar_lea.vmem %s3375_s26, 256 }
 0x474   : > { %p2645_p11 = scmp.ne.s32.totalorder %s3375_s26, %s2644_s28 }
 0x476   : > { %p2646_p2 = pnand %p2645_p11, %p3446_p0 }
 0x478   : > { %p2647_p3 = pneg %p2646_p2 }
 0x483   : > { %1173 = vadd.xlane.f32.xlu0 %v1172_v12 }
 0x499   : > { %1388 = vrot.lane.b32.xlu0 %v2979_v15, %s2740_s16 }
 0x49d   : > { %1776 = vrot.lane.b32.xlu0 %v2979_v15, %s2741_s10  ;;  %s3373_s10 = scalar_lea.hbm %s3426_s5, %s2264_s24 }
 0x4cf   : > { %v1385_v16 = vpop.xlane.xlu1 %1384 }
 0x4d7   : > { %v1579_v3 = vpop.xlane.xlu0 %1578 }
 0x4db   : > { %v1773_v19 = vpop.xlane.xlu1 %1772  ;;  %v786_v7 = vpop.xlane.xlu0 %785 }
 0x4df   : > { %v1967_v20 = vpop.xlane.xlu1 %1966  ;;  %v984_v18 = vpop.permute.xlu0 %983 }
 0x4e3   : > { %v592_v21 = vpop.xlane.xlu1 %591 }
 0x4e4   : > { %2538 = vrcp.f32 %v592_v21 }
 0x4e5   : > { %2540 = vrcp.f32 %v786_v7 }
 0x4e7   : > { %v980_v23 = vpop.xlane.xlu1 %979 }
 0x4e8   : > { %2542 = vrcp.f32 %v980_v23 }
 0x4eb   : > { %v1178_v13 = vpop.permute.xlu1 %1177 }
 0x4ee   : > { %v2539_v52 = vpop.eup %2538 }
 0x4ef   : > { %v594_v24 = vmul.f32 %v2539_v52, %v2533_v5  ;;  %v2541_v25 = vpop.eup %2540  ;;  %v1583_v30 = vpop.permute.xlu1 %1582 }
 0x4f0   : > { %v788_v15 = vmul.f32 %v2541_v25, %v2527_v60 }
 0x4f1   : > { %2339 = vmatmul.mubr.msk.f32.vlgmr.msra.gmra.mrb[2].mxu1 %vm509_vm2, %v594_v24 }
 0x4f2   : > { %2347 = vmatpush3.msra.mxu1 %v790_v17  ;;  %2348 = vmatprep.mubr.msk.f32.mxu1 %vm2722_vm1, %v2721_v14  ;;  %v2543_v8 = vpop.eup %2542 }
 0x4f3   : > { %2356 = vmatprep.subr.mxu1 %v2721_v14  ;;  %v982_v26 = vmul.f32 %v2543_v8, %v2535_v6  ;;  %v1971_v37 = vpop.permute.xlu1 %1970 }
 0x4f5   : > { %2349 = vmatmul.mubr.msk.f32.vlgmr.msra.gmra.mrb[4].mxu1 %vm509_vm2, %v788_v15  ;;  %v2256_v15 = vld [vmem:[%s3424_s3] ss:$0 sm:$0xff] }
 0x4f6   : > { %2357 = vmatpush3.msra.mxu1 %v984_v18  ;;  %2358 = vmatprep.mubr.msk.f32.mxu1 %vm2722_vm1, %v2721_v14 }
 0x4f7   : > { %2366 = vmatprep.subr.mxu1 %v2721_v14 }
 0x4f9   : > { %2359 = vmatmul.mubr.msk.f32.vlgmr.msra.gmra.mrb[6].mxu1 %vm509_vm2, %v982_v26  ;;  %v2257_v26 = vld [vmem:[%s3425_s4] ss:$0 sm:$0xff] }
 0x4fa   : > { %2367 = vmatpush3.msra.mxu1 %v1178_v13  ;;  %2368 = vmatprep.mubr.msk.f32.mxu1 %vm2722_vm1, %v2721_v14 }
 0x4fb   : > { %2376 = vmatprep.subr.mxu1 %v2721_v14 }
 0x510   : > { %v1174_v27 = vpop.xlane.xlu0 %1173 }
 0x511   : > { %2544 = vrcp.f32 %v1174_v27 }
 0x512   : > { %2546 = vrcp.f32 %v1385_v16 }
 0x513   : > { %2548 = vrcp.f32 %v1579_v3 }
 0x514   : > { %2550 = vrcp.f32 %v1773_v19  ;;  %v1389_v31 = vpop.permute.xlu0 %1388 }
 0x515   : > { %2552 = vrcp.f32 %v1967_v20 }
 0x518   : > { %v1777_v33 = vpop.permute.xlu0 %1776 }
 0x51b   : > { %v2545_v28 = vpop.eup %2544 }
 0x51c   : > { %v1176_v39 = vmul.f32 %v2545_v28, %v2537_v11  ;;  %v2547_v29 = vpop.eup %2546 }
 0x51d   : > { %v1387_v22 = vmul.f32 %v2547_v29, %v3289_v43  ;;  %v2549_v53 = vpop.eup %2548 }
 0x51e   : > { %2369 = vmatmul.mubr.msk.f32.vlgmr.msra.gmra.mrb[8].mxu1 %vm509_vm2, %v1176_v39  ;;  %v1581_v32 = vmul.f32 %v2549_v53, %v3294_v57  ;;  %v2551_v35 = vpop.eup %2550 }
 0x51f   : > { %2377 = vmatpush3.msra.mxu1 %v1389_v31  ;;  %2378 = vmatprep.mubr.msk.f32.mxu1 %vm2722_vm1, %v2721_v14  ;;  %v1775_v59 = vmul.f32 %v2551_v35, %v3298_v61  ;;  %v2553_v34 = vpop.eup %2552 }
 0x520   : > { %2386 = vmatprep.subr.mxu1 %v2721_v14  ;;  %v1969_v40 = vmul.f32 %v2553_v34, %v3303_v2 }
 0x522   : > { %2379 = vmatmul.mubr.msk.f32.vlgmr.msra.gmra.mrb[10].mxu1 %vm509_vm2, %v1387_v22 }
 0x523   : > { %2387 = vmatpush3.msra.mxu1 %v1583_v30  ;;  %2388 = vmatprep.mubr.msk.f32.mxu1 %vm2722_vm1, %v2721_v14 }
 0x524   : > { %2396 = vmatprep.subr.mxu1 %v2721_v14 }
 0x526   : > { %2389 = vmatmul.mubr.msk.f32.vlgmr.msra.gmra.mrb[12].mxu1 %vm509_vm2, %v1581_v32 }
 0x527   : > { %2397 = vmatpush3.msra.mxu1 %v1777_v33  ;;  %2398 = vmatprep.mubr.msk.f32.mxu1 %vm2722_vm1, %v2721_v14 }
 0x528   : > { %2406 = vmatprep.subr.mxu1 %v2721_v14 }
 0x52a   : > { %2399 = vmatmul.mubr.msk.f32.vlgmr.msra.gmra.mrb[14].mxu1 %vm509_vm2, %v1775_v59 }
 0x52b   : > { %2407 = vmatpush3.msra.mxu1 %v1971_v37  ;;  %2408 = vmatprep.mubr.msk.f32.mxu1 %vm2722_vm1, %v2721_v14 }
 0x52e   : > { %2409 = vmatmul.mubr.msk.f32.vlgmr.msra.gmra.mrb[16].mxu1 %vm509_vm2, %v1969_v40 }
 0x5c4   : > { %v667_v36 = vpop.f32.mrb[2].mxu1 }
 0x5c5   : > { %v2340_v42 = vpop.f32.mrb[3].mxu1 }
 0x5c8   : > { %v861_v44 = vpop.f32.mrb[4].mxu1 }
 0x5c9   : > { %1254 = vrot.lane.b32.xlu0 %v861_v44, %s2743_s13  ;;  %v2350_v43 = vpop.f32.mrb[5].mxu1 }
 0x5cc   : > { %v1055_v45 = vpop.f32.mrb[6].mxu1 }
 0x5cd   : > { %1258 = vrot.lane.b32.xlu0 %v1055_v45, %s2744_s9  ;;  %v2360_v46 = vpop.f32.mrb[7].mxu1 }
 0x5f1   : > { %v1249_v49 = vpop.f32.mrb[8].mxu1 }
 0x5f2   : > { %1262 = vrot.lane.b32.xlu0 %v1249_v49, %s2745_s30  ;;  %v2370_v50 = vpop.f32.mrb[9].mxu1 }
 0x5f5   : > { %v1460_v14 = vpop.f32.mrb[10].mxu1 }
 0x5f6   : > { %v2380_v51 = vpop.f32.mrb[11].mxu1 }
 0x5f9   : > { %v1654_v41 = vpop.f32.mrb[12].mxu1 }
 0x5fa   : > { %2047 = vrot.lane.b32.xlu1 %v1654_v41, %s2743_s13  ;;  %v2390_v54 = vpop.f32.mrb[13].mxu1 }
 0x5fd   : > { %v1848_v55 = vpop.f32.mrb[14].mxu1 }
 0x5fe   : > { %2051 = vrot.lane.b32.xlu1 %v1848_v55, %s2744_s9  ;;  %v2400_v56 = vpop.f32.mrb[15].mxu1  ;;  %s2648_s9 = sshll.u32 %s2746_s22, 4  ;;  %s2649_s9 = int_to_ptr.vmem [resolvable:$false] %s2648_s9 }
 0x5ff   : > { %p2651_p7 = scmp.lt.s32.totalorder %s3375_s26, %s2649_s9 }
 0x601   : > { %v2042_v57 = vpop.f32.mrb[16].mxu1 }
 0x602   : > { %2055 = vrot.lane.b32.xlu1 %v2042_v57, %s2745_s30  ;;  %v2410_v58 = vpop.f32.mrb[17].mxu1  ;;  %s2650_s30 = scalar_lea.vmem %s2649_s9, 512 }
 0x603   : > { %p2652_p9 = scmp.lt.s32.totalorder %s2650_s30, %s2644_s28 }
 0x605   : > { %p2653_p12 = por %p2652_p9, %p2651_p7 }
 0x607   : > { %p2654_p1 = pnand %p2653_p12, %p2647_p3 }
 0x63b   : > { %v1255_v47 = vpop.permute.xlu0 %1254 }
 0x63c   : > { %v1265_v60 = vsel %vm509_vm2, %v667_v36, %v1255_v47 }
 0x63f   : > { %v1259_v38 = vpop.permute.xlu0 %1258 }
 0x640   : > { %v1267_v61 = vsel %vm1266_vm12, %v1265_v60, %v1259_v38 }
 0x664   : > { %v1263_v63 = vpop.permute.xlu0 %1262 }
 0x665   : > { %v1269_v1 = vsel %vm1268_vm13, %v1267_v61, %v1263_v63 }
 0x666   : > { %v2061_v0 = vsel %vm280_vm0, %v1269_v1, 0.0 }
 0x667   : > { %2062 = vadd.xlane.f32.xlu0 %v2061_v0 }
 0x66c   : > { %v2048_v2 = vpop.permute.xlu1 %2047 }
 0x66d   : > { %v2058_v5 = vsel %vm509_vm2, %v1460_v14, %v2048_v2 }
 0x670   : > { %v2052_v4 = vpop.permute.xlu1 %2051 }
 0x671   : > { %v2059_v62 = vsel %vm1266_vm12, %v2058_v5, %v2052_v4 }
 0x674   : > { %v2056_v6 = vpop.permute.xlu1 %2055 }
 0x675   : > { %v2060_v9 = vsel %vm1268_vm13, %v2059_v62, %v2056_v6 }
 0x676   : > { %v2064_v10 = vsel %vm280_vm0, %v2060_v9, 0.0 }
 0x677   : > { %2065 = vadd.xlane.f32.xlu1 %v2064_v10 }
 0x6f4   : > { %v2063_v48 = vpop.xlane.xlu0 %2062 }
 0x6f5   : > { %v2068_v11 = vmul.f32 0.03125, %v2063_v48 }
 0x6f7   : > { %v2070_v12 = vsub.f32 %v1269_v1, %v2068_v11 }
 0x6f9   : > { %v2072_v17 = vmul.f32 %v2070_v12, %v2070_v12 }
 0x6fb   : > { %v2074_v16 = vsel %vm280_vm0, %v2072_v17, 0.0 }
 0x6fc   : > { %2075 = vadd.xlane.f32.xlu0 %v2074_v16 }
 0x704   : > { %v2066_v19 = vpop.xlane.xlu1 %2065 }
 0x705   : > { %v2069_v3 = vmul.f32 0.03125, %v2066_v19 }
 0x707   : > { %v2071_v20 = vsub.f32 %v2060_v9, %v2069_v3 }
 0x709   : > { %v2073_v7 = vmul.f32 %v2071_v20, %v2071_v20 }
 0x70b   : > { %v2077_v21 = vsel %vm280_vm0, %v2073_v7, 0.0 }
 0x70c   : > { %2078 = vadd.xlane.f32.xlu0 %v2077_v21 }
 0x789   : > { %v2076_v23 = vpop.xlane.xlu0 %2075 }
 0x78a   : > { %v2080_v52 = vmul.f32 0.03125, %v2076_v23 }
 0x78c   : > { %v2082_v24 = vadd.f32 1e-05, %v2080_v52 }
 0x78e   : > { %2554 = vrsqrt.f32 %v2082_v24 }
 0x798   : > { %v2555_v25 = vpop.eup %2554 }
 0x799   : > { %v2086_v8 = vmul.f32 %v2555_v25, %v2070_v12  ;;  %v2079_v18 = vpop.xlane.xlu0 %2078 }
 0x79a   : > { %v2081_v13 = vmul.f32 0.03125, %v2079_v18 }
 0x79b   : > { %v2095_v27 = vmul.f32 %v2256_v15, %v2086_v8 }
 0x79c   : > { %v2083_v28 = vadd.f32 1e-05, %v2081_v13 }
 0x79d   : > { %v2104_v39 = vadd.f32 %v2257_v26, %v2095_v27 }
 0x79e   : > { %2556 = vrsqrt.f32 %v2083_v28 }
 0x79f   : > { %2106 = vst.msk [vmem:[%s271_s12] sm:$0xff] %vm280_vm0, %v2104_v39 }
 0x7a8   : > { %v2557_v29 = vpop.eup %2556 }
 0x7a9   : > { %v2087_v31 = vmul.f32 %v2557_v29, %v2071_v20 }
 0x7ab   : > { %v2096_v22 = vmul.f32 %v2256_v15, %v2087_v31 }
 0x7ad   : > { %v2105_v53 = vadd.f32 %v2257_v26, %v2096_v22 }
 0x7af   : > { %2107 = vst.msk [vmem:[%s271_s12 + $0x8] sm:$0xff] %vm280_vm0, %v2105_v53 }
 0x7b0   : > { %2657 = shalt.err (!%p2654_p1)
}
 0x7b1   : > { %s2658_s11 = scalar_lea.hbm %s3373_s10, 256  ;;  %s2662_s8 = scalar_lea.hbm %s3426_s5, 512 }
 0x7b2   : > { %p2659_p13 = scmp.ne.s32.totalorder %s3373_s10, %s2658_s11  ;;  %p2663_p4 = scmp.lt.u32.totalorder %s3373_s10, %s3426_s5 }
 0x7b3   : > { %p2664_p5 = scmp.lt.u32.totalorder %s2662_s8, %s2658_s11  ;;  %p2666_p11 = scmp.lt.u32.totalorder %s2658_s11, %s3373_s10 }
 0x7b4   : > { %p2660_p6 = pnand %p2659_p13, %p3446_p0 }
 0x7b5   : > { %p2665_p8 = por %p2664_p5, %p2663_p4 }
 0x7b6   : > { %p2661_p10 = pneg %p2660_p6 }
 0x7b7   : > { %p2667_p2 = por %p2666_p11, %p2665_p8 }
 0x7b9   : > { %p2668_p3 = pnand %p2667_p2, %p2661_p10 }
 0x7bb   : > { %2671 = shalt.err (!%p2668_p3)
}
 0x7bc   : > { %s2747_s15 = smov 128  }
 0x7bd   : > { %2437 = dma.vmem_to_hbm [thread:$0]  (%p3446_p0), %s3375_s26, 256, %s3373_s10, %s2109_s6, %s2747_s15, %s2747_s15, %s2743_s13  }
 0x7be PF: > { %s2137_s16 = sand.u32 1, %s2702_s18   ;;  %p3447_p7 = scmp.ne.s32.totalorder %s3431_s25, 0 }
 0x7bf   : > { %p3448_p9 = scmp.ge.s32.totalorder %s2714_s21, 2  ;;  %s2138_s28 = scalar_lea.sflag [#allocation4], %s2137_s16 }
 0x7c1   : > { %p2451_p12 = pnand %p3448_p9, %p3447_p7 }
 0x7c3   : > { %2697 = dma.done.wait (!%p2451_p12), %s2138_s28, 256  }
 0x7c4   : > { %2699 = vsyncadd (!%p2451_p12), %s2138_s28, 4294967040  ;;  %p19_p1 = scmp.ge.s32.totalorder %s2894_s29, 4   ;;  %s3449_s18 = smov %s2706_s19 }
 0x7c5   : > { %s3450_s19 = smov %s2710_s20  ;;  %s3451_s20 = smov %s2910_s27 }
 0x7c6   : > { %s3452_s21 = smov %s2894_s29  ;;  %21 = sbr.rel (!%p19_p1) target bundleno = 6 (0x6), region = 93 }
 0x7cd   :  { %2143 = vsyncpa [#allocation3], 1 }
 0x7ce   :  { %2145 = vsyncpa [#allocation3 + $0x1], 1 }
 0x7cf   :  { %2146 = vsyncpa [#allocation6], 1 }
 0x7d0   :  { %2147 = vsyncpa [#allocation4], 1 }
 0x7d1   :  { %2149 = vsyncpa [#allocation4 + $0x1], 1 }

</bundles_post_ra>
